<compile_context>
chip_gen: v6e
topology: v6e:2x2x1
jax: 0.10.0
libtpu: 0.0.40
codegen_flags: <defaults>
</compile_context>

<pallas_src>
import functools
import math

import jax
import jax.numpy as jnp
from jax import lax
from jax.experimental import pallas as pl
from jax.experimental.pallas import tpu as pltpu

F32 = jnp.float32
BF16 = jnp.bfloat16

TM_CAP = 256      # M tile cap
TK_CAP = 1536     # K tile cap  -> weight block <= 1536x640 bf16 (~1.9 MB)
TN_CAP = 640      # N tile cap  -> >=2 parallel N blocks whenever N >= 1280


# ----------------------------------------------------------------------------
# Static: pytree wrapper so jax.jit treats layer metadata (ints / strings) as
# static structure instead of traced values.
# ----------------------------------------------------------------------------
@jax.tree_util.register_pytree_node_class
class Static:
    __slots__ = ("value",)

    def __init__(self, value):
        self.value = value

    def tree_flatten(self):
        return (), self.value

    @classmethod
    def tree_unflatten(cls, aux, children):
        del children
        return cls(aux)


def _round_up(x, m):
    return (x + m - 1) // m * m


def _m_pad(M):
    Mp = _round_up(max(M, 1), 8)
    if Mp < 64:
        Mp = 64                      # bucket tiny M -> shared kernels, free (weight-bound)
    tm = min(Mp, TM_CAP)
    Mp = _round_up(Mp, tm)
    return Mp, tm


def _kn_pad(K, N):
    """Bucketed (K, N) padding + tile choice; used at build time AND call time."""
    Np = _round_up(N, 128)
    if Np <= TN_CAP:
        tn = Np
    else:
        tn = TN_CAP
        Np = _round_up(Np, tn)
    Kp = _round_up(K, 128)
    if Kp <= TK_CAP:
        tk = Kp
    else:
        ks = -(-Kp // TK_CAP)
        tk = _round_up(-(-Kp // ks), 128)
        Kp = tk * ks
    return Kp, Np, tk, tn


# ----------------------------------------------------------------------------
# Tiled matmul + bias (+ optional fused SiLU); bf16 in, f32 accumulate.
# Two variants: single K step (no scratch) and multi K step (f32 accumulator).
# ----------------------------------------------------------------------------
def _mm1_kernel(x_ref, w_ref, b_ref, o_ref, *, act):
    r = jnp.dot(x_ref[...], w_ref[...],
                preferred_element_type=jnp.float32) + b_ref[...]
    if act == "silu":
        r = r * jax.nn.sigmoid(r)
    o_ref[...] = r.astype(o_ref.dtype)


def _mmk_kernel(x_ref, w_ref, b_ref, o_ref, acc_ref, *, act):
    k = pl.program_id(2)

    @pl.when(k == 0)
    def _():
        acc_ref[...] = jnp.zeros_like(acc_ref)

    acc_ref[...] += jnp.dot(x_ref[...], w_ref[...],
                            preferred_element_type=jnp.float32)

    @pl.when(k == pl.num_programs(2) - 1)
    def _():
        r = acc_ref[...] + b_ref[...]
        if act == "silu":
            r = r * jax.nn.sigmoid(r)
        o_ref[...] = r.astype(o_ref.dtype)


@functools.lru_cache(maxsize=None)
def _matmul_fn(Mp, Kp, Np, tm, tk, tn, act, out_dtype_name):
    out_dtype = jnp.dtype(out_dtype_name)
    if Kp == tk:                                          # single K step
        f = pl.pallas_call(
            functools.partial(_mm1_kernel, act=act),
            out_shape=jax.ShapeDtypeStruct((Mp, Np), out_dtype),
            grid_spec=pltpu.PrefetchScalarGridSpec(
                num_scalar_prefetch=0,
                grid=(Mp // tm, Np // tn),
                in_specs=[pl.BlockSpec((tm, tk), lambda i, j: (i, 0)),
                          pl.BlockSpec((tk, tn), lambda i, j: (0, j)),
                          pl.BlockSpec((1, tn), lambda i, j: (0, j))],
                out_specs=pl.BlockSpec((tm, tn), lambda i, j: (i, j))),
            compiler_params=pltpu.CompilerParams(
                dimension_semantics=("parallel", "parallel")),
        )
    else:
        f = pl.pallas_call(
            functools.partial(_mmk_kernel, act=act),
            out_shape=jax.ShapeDtypeStruct((Mp, Np), out_dtype),
            grid_spec=pltpu.PrefetchScalarGridSpec(
                num_scalar_prefetch=0,
                grid=(Mp // tm, Np // tn, Kp // tk),
                in_specs=[pl.BlockSpec((tm, tk), lambda i, j, k: (i, k)),
                          pl.BlockSpec((tk, tn), lambda i, j, k: (k, j)),
                          pl.BlockSpec((1, tn), lambda i, j, k: (0, j))],
                out_specs=pl.BlockSpec((tm, tn), lambda i, j, k: (i, j)),
                scratch_shapes=[pltpu.VMEM((tm, tn), jnp.float32)]),
            compiler_params=pltpu.CompilerParams(
                dimension_semantics=("parallel", "parallel", "arbitrary")),
        )
    return jax.jit(f)


def matmul_bias_act(x, p, act="none", out_dtype=F32):
    # x: (M, K); p["w"]: (Kp, Np) bf16 pre-padded, p["b"]: (1, Np) f32.
    K, N = p["kn"].value
    M = x.shape[0]
    Kp, Np, tk, tn = _kn_pad(K, N)
    Mp, tm = _m_pad(M)
    xp = jnp.pad(x, ((0, Mp - M), (0, Kp - K))).astype(BF16)
    fn = _matmul_fn(Mp, Kp, Np, tm, tk, tn, act, jnp.dtype(out_dtype).name)
    out = fn(xp, p["w"], p["b"])
    return out[:M, :N]


def linear(p, x, act="none", out_dtype=F32):
    lead = x.shape[:-1]
    y = matmul_bias_act(x.reshape(-1, x.shape[-1]), p, act=act, out_dtype=out_dtype)
    return y.reshape(lead + (p["kn"].value[1],))


def conv2d(p, x, stride=1):
    C, kh, kw = p["conv_meta"].value
    O = p["kn"].value[1]
    N, _, H, W = x.shape
    if kh == 1 and kw == 1 and stride == 1:
        Ho, Wo = H, W
        cols = x.transpose(0, 2, 3, 1).reshape(N * H * W, C)
    else:
        ph, pw = (kh - 1) // 2, (kw - 1) // 2
        Ho = (H + 2 * ph - kh) // stride + 1
        Wo = (W + 2 * pw - kw) // stride + 1
        patches = lax.conv_general_dilated_patches(
            x, (kh, kw), (stride, stride), [(ph, ph), (pw, pw)])
        cols = patches.transpose(0, 2, 3, 1).reshape(N * Ho * Wo, C * kh * kw)
    y = matmul_bias_act(cols, p)
    return y.reshape(N, Ho, Wo, O).transpose(0, 3, 1, 2)


# ----------------------------------------------------------------------------
# GroupNorm (+fused SiLU): lane-dense (G, cg*HW) rows, centered variance.
# ----------------------------------------------------------------------------
def _gn_kernel(x_ref, g_ref, b_ref, o_ref, *, eps, silu):
    x = x_ref[0]                                      # (G, L)
    m = jnp.mean(x, axis=1, keepdims=True)
    d = x - m
    v = jnp.mean(d * d, axis=1, keepdims=True)        # centered, never negative
    y = d * lax.rsqrt(v + eps) * g_ref[...] + b_ref[...]
    if silu:
        y = y * jax.nn.sigmoid(y)
    o_ref[0] = y


@functools.lru_cache(maxsize=None)
def _gn_fn(N, G, L, eps, silu):
    f = pl.pallas_call(
        functools.partial(_gn_kernel, eps=eps, silu=silu),
        out_shape=jax.ShapeDtypeStruct((N, G, L), F32),
        grid_spec=pltpu.PrefetchScalarGridSpec(
            num_scalar_prefetch=0, grid=(N,),
            in_specs=[pl.BlockSpec((1, G, L), lambda n: (n, 0, 0)),
                      pl.BlockSpec((G, L), lambda n: (0, 0)),
                      pl.BlockSpec((G, L), lambda n: (0, 0))],
            out_specs=pl.BlockSpec((1, G, L), lambda n: (n, 0, 0))),
        compiler_params=pltpu.CompilerParams(dimension_semantics=("parallel",)),
    )
    return jax.jit(f)


def groupnorm(p, x, groups=32, eps=1e-5, silu=False):
    N, C, H, W = x.shape
    HW = H * W
    cg = C // groups
    L = cg * HW
    xg = x.reshape(N, groups, L)
    gview = jnp.broadcast_to(p["gamma"].reshape(groups, cg, 1),
                             (groups, cg, HW)).reshape(groups, L)
    bview = jnp.broadcast_to(p["beta"].reshape(groups, cg, 1),
                             (groups, cg, HW)).reshape(groups, L)
    out = _gn_fn(N, groups, L, float(eps), bool(silu))(xg, gview, bview)
    return out.reshape(N, C, H, W)


# ----------------------------------------------------------------------------
# LayerNorm over channels (lane dim), centered variance.
# ----------------------------------------------------------------------------
def _ln_kernel(x_ref, g_ref, b_ref, o_ref, *, eps):
    x = x_ref[0]                                      # (S, C)
    m = jnp.mean(x, axis=1, keepdims=True)
    d = x - m
    v = jnp.mean(d * d, axis=1, keepdims=True)
    o_ref[0] = d * lax.rsqrt(v + eps) * g_ref[...] + b_ref[...]


@functools.lru_cache(maxsize=None)
def _ln_fn(N, S, C, eps):
    f = pl.pallas_call(
        functools.partial(_ln_kernel, eps=eps),
        out_shape=jax.ShapeDtypeStruct((N, S, C), F32),
        grid_spec=pltpu.PrefetchScalarGridSpec(
            num_scalar_prefetch=0, grid=(N,),
            in_specs=[pl.BlockSpec((1, S, C), lambda n: (n, 0, 0)),
                      pl.BlockSpec((1, C), lambda n: (0, 0)),
                      pl.BlockSpec((1, C), lambda n: (0, 0))],
            out_specs=pl.BlockSpec((1, S, C), lambda n: (n, 0, 0))),
        compiler_params=pltpu.CompilerParams(dimension_semantics=("parallel",)),
    )
    return jax.jit(f)


def layernorm(p, x, eps=1e-5):
    N, S, C = x.shape
    return _ln_fn(N, S, C, float(eps))(x, p["gamma"], p["beta"])


# ----------------------------------------------------------------------------
# Attention core: all heads packed per grid step, bf16 MXU, 1/sqrt(d) pre-folded
# into the q projection weights; bf16 output.
# ----------------------------------------------------------------------------
def _attn_kernel(q_ref, k_ref, v_ref, o_ref):
    q = q_ref[0]                                      # (H, Sq, Dp) bf16
    k = k_ref[0]
    v = v_ref[0]
    s = jnp.einsum("hqd,hkd->hqk", q, k, preferred_element_type=jnp.float32)
    m = jnp.max(s, axis=-1, keepdims=True)
    e = jnp.exp(s - m)
    p = e * pl.reciprocal(jnp.sum(e, axis=-1, keepdims=True), approx=True)
    o = jnp.einsum("hqk,hkd->hqd", p.astype(v.dtype), v,
                   preferred_element_type=jnp.float32)
    o_ref[0] = o.astype(o_ref.dtype)


@functools.lru_cache(maxsize=None)
def _attn_fn(B, H, Sq, Skv, Dp):
    f = pl.pallas_call(
        _attn_kernel,
        out_shape=jax.ShapeDtypeStruct((B, H, Sq, Dp), BF16),
        grid_spec=pltpu.PrefetchScalarGridSpec(
            num_scalar_prefetch=0, grid=(B,),
            in_specs=[pl.BlockSpec((1, H, Sq, Dp), lambda b: (b, 0, 0, 0)),
                      pl.BlockSpec((1, H, Skv, Dp), lambda b: (b, 0, 0, 0)),
                      pl.BlockSpec((1, H, Skv, Dp), lambda b: (b, 0, 0, 0))],
            out_specs=pl.BlockSpec((1, H, Sq, Dp), lambda b: (b, 0, 0, 0))),
        compiler_params=pltpu.CompilerParams(dimension_semantics=("parallel",)),
    )
    return jax.jit(f)


def mha(p, x, context=None):
    # nn.MultiheadAttention: bias-free in-proj, biased out-proj, dropout=0.
    N, S, E = x.shape
    ctx = x if context is None else context
    Skv = ctx.shape[1]
    H = p["num_heads"].value
    Dh = E // H
    Dp = _round_up(Dh, 128)

    q = linear(p["q"], x, out_dtype=BF16)             # 1/sqrt(Dh) pre-folded
    k = linear(p["k"], ctx, out_dtype=BF16)
    v = linear(p["v"], ctx, out_dtype=BF16)
    q = q.reshape(N, S, H, Dh).transpose(0, 2, 1, 3)
    k = k.reshape(N, Skv, H, Dh).transpose(0, 2, 1, 3)
    v = v.reshape(N, Skv, H, Dh).transpose(0, 2, 1, 3)
    pad = ((0, 0), (0, 0), (0, 0), (0, Dp - Dh))
    qp, kp, vp = jnp.pad(q, pad), jnp.pad(k, pad), jnp.pad(v, pad)

    o = _attn_fn(N, H, S, Skv, Dp)(qp, kp, vp)[..., :Dh]
    o = o.transpose(0, 2, 1, 3).reshape(N, S, E)
    return linear(p["o"], o)


# ----------------------------------------------------------------------------
# Model blocks (plain-JAX glue around the Pallas kernels; fused by the outer jit)
# ----------------------------------------------------------------------------
def time_embedding(p, t):
    t = linear(p["l1"], t, act="silu")                # Linear -> SiLU fused
    return linear(p["l2"], t)


def residual_block(p, feature, time):
    residue = feature
    h = groupnorm(p["gn_feature"], feature, eps=1e-5, silu=True)
    h = conv2d(p["conv_feature"], h)
    t = jax.nn.silu(time)
    t = linear(p["linear_time"], t)
    merged = h + t[:, :, None, None]
    merged = groupnorm(p["gn_merged"], merged, eps=1e-5, silu=True)
    merged = conv2d(p["conv_merged"], merged)
    if p["residual"] is None:
        return merged + residue
    return merged + conv2d(p["residual"], residue)


def attention_block(p, x, context):
    residue_long = x
    h = groupnorm(p["gn"], x, eps=1e-6, silu=False)
    h = conv2d(p["conv_input"], h)
    n, c, hh, ww = h.shape
    h = h.reshape(n, c, hh * ww).transpose(0, 2, 1)   # (n, hw, c)

    res = h
    h = layernorm(p["ln1"], h)
    h = mha(p["attn1"], h, None)
    h = h + res

    res = h
    h = layernorm(p["ln2"], h)
    h = mha(p["attn2"], h, context)
    h = h + res

    res = h
    h = layernorm(p["ln3"], h)
    g = linear(p["geglu1"], h)
    a, gate = jnp.split(g, 2, axis=-1)
    # TODO(synk): fuse exact-erf GELU gate into the geglu1 epilogue at real res.
    h = a * jax.nn.gelu(gate, approximate=False)
    h = linear(p["geglu2"], h)
    h = h + res

    h = h.transpose(0, 2, 1).reshape(n, c, hh, ww)
    return conv2d(p["conv_output"], h) + residue_long


def upsample(p, x):
    x = jnp.repeat(jnp.repeat(x, 2, axis=2), 2, axis=3)   # nearest, scale 2
    return conv2d(p["conv"], x)


def final_layer(p, x):
    x = groupnorm(p["gn"], x, eps=1e-5, silu=True)
    return conv2d(p["conv"], x)


def run_switch(layers, x, context, time):
    for kind_s, p in layers:
        kind = kind_s.value
        if kind == "res":
            x = residual_block(p, x, time)
        elif kind == "attn":
            x = attention_block(p, x, context)
        elif kind == "conv":
            x = conv2d(p["p"], x, stride=p["stride"].value)
        elif kind == "up":
            x = upsample(p, x)
    return x


def unet_forward(p, x, context, time):
    skips = []
    for layers in p["encoders"]:
        x = run_switch(layers, x, context, time)
        skips.append(x)
    x = run_switch(p["bottleneck"], x, context, time)
    for layers in p["decoders"]:
        x = jnp.concatenate([x, skips.pop()], axis=1)
        x = run_switch(layers, x, context, time)
    return x


def diffusion_forward(params, latent, context, time):
    t = time_embedding(params["time_embedding"], time)
    x = unet_forward(params["unet"], latent, context, t)
    return final_layer(params["final"], x)


# ----------------------------------------------------------------------------
# Deterministic synthetic parameters: pre-transposed to (K, N) matmul layout,
# pre-padded to the tile buckets, pre-cast to bf16, drawn from one PRNG pool.
# ----------------------------------------------------------------------------
class ParamGen:
    def __init__(self, key, pool_size=1 << 22):
        self.pool = jax.random.normal(key, (pool_size,), F32)
        self.n = pool_size
        self.off = 0

    def _draw(self, cnt, scale):
        start = self.off % self.n
        self.off += cnt + 100003
        reps = (start + cnt + self.n - 1) // self.n
        flat = jnp.tile(self.pool, reps)[start:start + cnt]
        return flat * scale

    def matmul_params(self, K, N, scale_mult=1.0):
        Kp, Np, _, _ = _kn_pad(K, N)
        w = self._draw(Kp * Np, scale_mult / math.sqrt(K)).reshape(Kp, Np).astype(BF16)
        return {"w": w, "b": jnp.zeros((1, Np), F32), "kn": Static((K, N))}

    def linear(self, in_f, out_f):
        return self.matmul_params(in_f, out_f)

    def conv(self, in_c, out_c, k):
        d = self.matmul_params(in_c * k * k, out_c)
        d["conv_meta"] = Static((in_c, k, k))
        return d

    def gn(self, c):
        return {"gamma": jnp.ones((c,), F32), "beta": jnp.zeros((c,), F32)}

    def ln(self, c):
        return {"gamma": jnp.ones((1, c), F32), "beta": jnp.zeros((1, c), F32)}

    def mha(self, embed_dim, num_heads, kdim=None):
        kdim = embed_dim if kdim is None else kdim
        dh = embed_dim // num_heads
        return {"num_heads": Static(num_heads),
                "q": self.matmul_params(embed_dim, embed_dim,
                                        scale_mult=1.0 / math.sqrt(dh)),
                "k": self.matmul_params(kdim, embed_dim),
                "v": self.matmul_params(kdim, embed_dim),
                "o": self.matmul_params(embed_dim, embed_dim)}


def build_unet(pg):
    def res(ic, oc):
        return (Static("res"),
                {"gn_feature": pg.gn(ic),
                 "conv_feature": pg.conv(ic, oc, 3),
                 "linear_time": pg.linear(1280, oc),
                 "gn_merged": pg.gn(oc),
                 "conv_merged": pg.conv(oc, oc, 3),
                 "residual": None if ic == oc else pg.conv(ic, oc, 1)})

    def attn(n_head, n_embd, n_ctx=768):
        c = n_head * n_embd
        return (Static("attn"),
                {"gn": pg.gn(c),
                 "conv_input": pg.conv(c, c, 1),
                 "ln1": pg.ln(c),
                 "attn1": pg.mha(c, n_head),
                 "ln2": pg.ln(c),
                 "attn2": pg.mha(c, n_head, kdim=n_ctx),
                 "ln3": pg.ln(c),
                 "geglu1": pg.linear(c, 4 * c * 2),
                 "geglu2": pg.linear(4 * c, c),
                 "conv_output": pg.conv(c, c, 1)})

    def conv(ic, oc, k, stride=1):
        return (Static("conv"), {"p": pg.conv(ic, oc, k), "stride": Static(stride)})

    def up(c):
        return (Static("up"), {"conv": pg.conv(c, c, 3)})

    encoders = [
        [conv(4, 320, 3)],
        [res(320, 320), attn(8, 40)],
        [res(320, 320), attn(8, 40)],
        [conv(320, 320, 3, stride=2)],
        [res(320, 640), attn(8, 80)],
        [res(640, 640), attn(8, 80)],
        [conv(640, 640, 3, stride=2)],
        [res(640, 1280), attn(8, 160)],
        [res(1280, 1280), attn(8, 160)],
        [conv(1280, 1280, 3, stride=2)],
        [res(1280, 1280)],
        [res(1280, 1280)],
    ]
    bottleneck = [res(1280, 1280), attn(8, 160), res(1280, 1280)]
    decoders = [
        [res(2560, 1280)],
        [res(2560, 1280)],
        [res(2560, 1280), up(1280)],
        [res(2560, 1280), attn(8, 160)],
        [res(2560, 1280), attn(8, 160)],
        [res(1920, 1280), attn(8, 160), up(1280)],
        [res(1920, 640), attn(8, 80)],
        [res(1280, 640), attn(8, 80)],
        [res(960, 640), attn(8, 80), up(640)],
        [res(960, 320), attn(8, 40)],
        [res(640, 320), attn(8, 40)],
        [res(640, 320), attn(8, 40)],
    ]
    return {"encoders": encoders, "bottleneck": bottleneck, "decoders": decoders}


def build_diffusion_params(key):
    pg = ParamGen(key)
    return {"time_embedding": {"l1": pg.linear(320, 1280),
                               "l2": pg.linear(1280, 1280)},
            "unet": build_unet(pg),
            "final": {"gn": pg.gn(320), "conv": pg.conv(320, 4, 3)}}


# ----------------------------------------------------------------------------
if __name__ == "__main__":
    params = build_diffusion_params(jax.random.PRNGKey(0))

    k1, k2, k3 = jax.random.split(jax.random.PRNGKey(0), 3)
    # Small shapes consistent with the module: batch=1, 4 latent channels,
    # spatial 8x8 (divisible by 8 so the 3 stride-2 / 3 upsample stages line up),
    # context seq 8 with the hard-coded cross-attention dim 768, time dim 320.
    latent = jax.random.normal(k1, (1, 4, 8, 8), F32)
    context = jax.random.normal(k2, (1, 8, 768), F32)
    time = jax.random.normal(k3, (1, 320), F32)

    forward = jax.jit(diffusion_forward)          # single end-to-end jit
    out = forward(params, latent, context, time)
    out = jax.block_until_ready(out)

    assert out.shape == (1, 4, 8, 8), out.shape
    assert bool(jnp.all(jnp.isfinite(out)))
    print("KERNEL_OK")
</pallas_src>

<mosaic_0001>
module attributes {stable_mosaic.version = 11 : i64} {
  func.func @_mm1_kernel(%arg0: i32, %arg1: i32, %arg2: memref<64x384xbf16, #tpu.memory_space<vmem>>, %arg3: memref<384x640xbf16, #tpu.memory_space<vmem>>, %arg4: memref<1x640xf32, #tpu.memory_space<vmem>>, %arg5: memref<64x640xf32, #tpu.memory_space<vmem>>) attributes {dimension_semantics = [#tpu.dimension_semantics<parallel>, #tpu.dimension_semantics<parallel>], iteration_bounds = array<i64: 1, 2>, scalar_prefetch = 0 : i64, scratch_operands = 0 : i64, tpu.core_type = #tpu.core_type<tc>, window_params = [{transform_indices = @transform_0, window_bounds = array<i64: 64, 384>}, {transform_indices = @transform_1, window_bounds = array<i64: 384, 640>}, {transform_indices = @transform_2, window_bounds = array<i64: 1, 640>}, {transform_indices = @transform_3, window_bounds = array<i64: 64, 640>}]} {
    %c0 = arith.constant 0 : index
    %c0_0 = arith.constant 0 : index
    %0 = vector.load %arg2[%c0, %c0_0] : memref<64x384xbf16, #tpu.memory_space<vmem>>, vector<64x384xbf16>
    %c0_1 = arith.constant 0 : index
    %c0_2 = arith.constant 0 : index
    %1 = vector.load %arg3[%c0_1, %c0_2] : memref<384x640xbf16, #tpu.memory_space<vmem>>, vector<384x640xbf16>
    %cst = arith.constant dense<0.000000e+00> : vector<64x640xf32>
    %2 = tpu.matmul %0, %1, %cst {dimension_numbers = #tpu.dot_dimension_numbers<[1], [0], [0], [1], [0, 0, 1, 1], [], []>} : vector<64x384xbf16>, vector<384x640xbf16>, vector<64x640xf32> -> vector<64x640xf32>
    %c0_3 = arith.constant 0 : index
    %c0_4 = arith.constant 0 : index
    %3 = vector.load %arg4[%c0_3, %c0_4] : memref<1x640xf32, #tpu.memory_space<vmem>>, vector<1x640xf32>
    %4 = vector.broadcast %3 : vector<1x640xf32> to vector<64x640xf32>
    %5 = arith.addf %2, %4 : vector<64x640xf32>
    %6 = arith.negf %5 : vector<64x640xf32>
    %7 = math.exp %6 : vector<64x640xf32>
    %cst_5 = arith.constant 1.000000e+00 : f32
    %8 = vector.broadcast %cst_5 : f32 to vector<64x640xf32>
    %9 = arith.addf %8, %7 : vector<64x640xf32>
    %10 = arith.divf %8, %9 : vector<64x640xf32>
    %11 = arith.mulf %5, %10 : vector<64x640xf32>
    %c0_6 = arith.constant 0 : index
    %c0_7 = arith.constant 0 : index
    %12 = vector.load %arg5[%c0_6, %c0_7] : memref<64x640xf32, #tpu.memory_space<vmem>>, vector<64x640xf32>
    tpu.vector_store %arg5[%c0_6, %c0_7], %11 {strides = array<i32>} : memref<64x640xf32, #tpu.memory_space<vmem>>, vector<64x640xf32>,
    return
  }
  func.func @transform_0(%arg0: i32, %arg1: i32) -> (i32, i32) {
    %c0_i32 = arith.constant 0 : i32
    %c0_i32_0 = arith.constant 0 : i32
    return %arg0, %c0_i32 : i32, i32
  }
  func.func @transform_1(%arg0: i32, %arg1: i32) -> (i32, i32) {
    %c0_i32 = arith.constant 0 : i32
    %c0_i32_0 = arith.constant 0 : i32
    return %c0_i32, %arg1 : i32, i32
  }
  func.func @transform_2(%arg0: i32, %arg1: i32) -> (i32, i32) {
    %c0_i32 = arith.constant 0 : i32
    %c0_i32_0 = arith.constant 0 : i32
    return %c0_i32, %arg1 : i32, i32
  }
  func.func @transform_3(%arg0: i32, %arg1: i32) -> (i32, i32) {
    %c0_i32 = arith.constant 0 : i32
    return %arg0, %arg1 : i32, i32
  }
}

</mosaic_0001>

<bundles_post_ra>
// kernel: tpu_custom_call.1
= control target key start
LH: loop header
LB: loop body
LE: loop exit
PB: predicated region body
PF: predicated region fallthrough
CT: control target
= control target key end

     0   :  { %8 = vsyncpa [#allocation3], 0  ;;  %s3581_s0 = inlined_call_operand.hbm [shape: bf16[64,384], index: 0, kind: input, shape index: {}]   ;;  %s3582_s1 = inlined_call_operand.hbm [shape: bf16[384,1280], index: 1, kind: input, shape index: {}]   ;;  %s3583_s2 = inlined_call_operand.hbm [shape: f32[1,1280], index: 2, kind: input, shape index: {}]   ;;  %s3584_s3 = inlined_call_operand.hbm [shape: f32[64,1280], index: 3, kind: output, shape index: {}]  }
   0x1   :  { %9 = vsyncpa [#allocation6], 0 }
   0x2   :  { %11 = vsyncpa [#allocation6 + $0x1], 0 }
   0x3   :  { %12 = vsyncpa [#allocation4], 0 }
   0x4   :  { %14 = vsyncpa [#allocation4 + $0x1], 0  ;;  %s2920_s12 = smov 0   ;;  %s2922_s13 = smov 0  }
   0x5   :  { %s2924_s14 = smov 0   ;;  %s2926_s15 = smov 0  }
   0x6   :  { %s2928_s16 = smov 0   ;;  %s2930_s17 = smov 0  }
   0x7 LB: > { %s29_s18 = sadd.s32 1, %s2881_s16  ;;  %s65_s19 = sadd.s32 1, %s2873_s14  ;;  %s2885_s17 = sphi %s2930_s17, %s20_s17   ;;  %s2881_s16 = sphi %s2928_s16, %s3604_s16   ;;  %s2877_s15 = sphi %s2926_s15, %s3603_s15   ;;  %s2873_s14 = sphi %s2924_s14, %s3602_s14   ;;  %s2869_s13 = sphi %s2922_s13, %s3601_s13   ;;  %s2865_s12 = sphi %s2920_s12, %s3600_s12  }
   0x8   : > { %p30_p0 = scmp.ge.s32.totalorder %s29_s18, 2  ;;  %p72_p1 = scmp.ne.s32.totalorder %s2873_s14, %s2869_s13 }
   0x9   : > { %p73_p2 = scmp.eq.s32.totalorder %s2885_s17, 0  ;;  %p2314_p5 = scmp.lt.s32.totalorder %s2885_s17, 2 }
   0xa   : > { %s3606_s18 = smov (%p30_p0, %s29_s18), 0  ;;  %s173_s21 = sand.u32 1, %s2885_s17  }
   0xb   : > { %p74_p4 = por %p73_p2, %p72_p1  ;;  %s62_s20 = ssub.s32 %s2881_s16, %s3606_s18 }
   0xc   : > { %p63_p6 = scmp.eq.s32.totalorder %s62_s20, 0  ;;  %s175_s22 = sand.u32 1, %s2873_s14  }
   0xd   : > { %s2204_s23 = smul.u32 320, %s2881_s16  ;;  %p2975_p7 = pnand %p2314_p5, %p74_p4 }
   0xe   : > { %s2968_s24 = scalar_select %p63_p6, %s2873_s14, %s65_s19  }
   0xf   : > { %s2283_s25 = smul.u32 960, %s175_s22  ;;  %s183_s28 = scalar_lea.hbm %s3582_s1, %s2204_s23 }
  0x10   : > { %s2979_s5 = scalar_lea.sflag [#allocation6], %s173_s21  ;;  %p3586_p8 = pneg %p2975_p7 }
  0x11   : > { %s177_s30 = scalar_lea.vmem [#allocation5], %s2283_s25  ;;  %s2887_s7 = smov [#allocation5]  }
  0x12   : > { %s184_s4 = sshll.u32 %s177_s30, 4  ;;  %s2737_s8 = sshll.u32 %s2887_s7, 4  ;;  %s185_s4 = int_to_ptr.vmem [resolvable:$true] %s184_s4  ;;  %s2738_s8 = int_to_ptr.vmem [resolvable:$false] %s2737_s8 }
  0x13   : > { %s2732_s6 = scalar_lea.vmem %s185_s4, 15360  ;;  %s2739_s9 = scalar_lea.vmem %s2738_s8, 30720 }
  0x14   : > { %p2733_p9 = scmp.ne.s32.totalorder %s185_s4, %s2732_s6  ;;  %p2740_p12 = scmp.lt.s32.totalorder %s185_s4, %s2738_s8 }
  0x15   : > { %p2741_p13 = scmp.lt.s32.totalorder %s2739_s9, %s2732_s6 }
  0x16   : > { %p2735_p10 = pnand %p2733_p9, %p3586_p8 }
  0x17   : > { %p2742_p0 = por %p2741_p13, %p2740_p12 }
  0x18   : > { %p2736_p11 = pneg %p2735_p10 }
  0x1a   : > { %p2743_p2 = pnand %p2742_p0, %p2736_p11 }
  0x1c   : > { %2746 = shalt.err (!%p2743_p2)
}
  0x1d   : > { %s2888_s10 = smov 640   ;;  %s2889_s11 = smov 320  }
  0x1e   : > { %s2890_s19 = smov 20   ;;  %s2990_s20 = sadd.s32 4294967295, %s2885_s17  }
  0x1f   : > { %2305 = dma.hbm_to_vmem [thread:$0]  (!%p2975_p7), %s183_s28, 15360, %s185_s4, %s2979_s5, %s2888_s10, %s2889_s11, %s2890_s19  }
  0x20   : > { %s2021_s21 = sadd.s32 4294967294, %s2885_s17   ;;  %p78_p4 = scmp.ne.s32.totalorder %s2869_s13, %s2865_s12 }
  0x21   : > { %p3585_p5 = scmp.eq.s32.totalorder %s2990_s20, 0  ;;  %p130_p6 = scmp.eq.s32.totalorder %s2990_s20, 1 }
  0x22   : > { %p136_p9 = scmp.eq.s32.totalorder %s2021_s21, 1  ;;  %p2022_p11 = scmp.ge.s32.totalorder %s2885_s17, 1 }
  0x23   : > { %p2999_p10 = por %p3585_p5, %p78_p4  ;;  %p3007_p12 = por %p130_p6, %p72_p1 }
  0x24   : > { %p3011_p13 = por %p136_p9, %p78_p4  ;;  %p143_p0 = scmp.lt.s32.totalorder %s2885_s17, 3 }
  0x25   : > { %s3590_s25 = scalar_select %p3007_p12, 1, 0 }
  0x26   : > { %s3591_s26 = scalar_select %p3011_p13, 1, 0 }
  0x27   : > { %p3016_p2 = pnand %p2022_p11, %p143_p0  ;;  %s2891_s28 = smov [#allocation2]  }
  0x28   : > { %s159_s30 = sshll.u32 %s2891_s28, 4  ;;  %s2284_s4 = smul.u32 5, %s175_s22  ;;  %s160_s30 = int_to_ptr.vmem [resolvable:$true] %s159_s30 }
  0x29   : > { %p2298_p3 = pneg %p3016_p2  ;;  %s2205_s6 = smul.u32 80, %s2881_s16 }
  0x2a   : > { %s198_s11 = scalar_lea.vmem [#allocation7], %s2284_s4  ;;  %s2758_s21 = scalar_lea.vmem %s160_s30, 1536 }
  0x2b   : > { %p3027_p1 = pnand %p2298_p3, %p3585_p5  ;;  %s3034_s10 = scalar_lea.hbm %s3583_s2, %s2205_s6 }
  0x2c   : > { %s206_s19 = sshll.u32 %s198_s11, 4  ;;  %p2759_p6 = scmp.ne.s32.totalorder %s160_s30, %s2758_s21  ;;  %s207_s19 = int_to_ptr.vmem [resolvable:$true] %s206_s19 }
  0x2d   : > { %p2749_p4 = pneg %p3027_p1  ;;  %p2766_p0 = scmp.lt.s32.totalorder %s160_s30, %s160_s30 }
  0x2e   : > { %p2767_p3 = scmp.lt.s32.totalorder %s2758_s21, %s2758_s21 }
  0x2f   : > { %p2761_p9 = pnand %p2759_p6, %p2749_p4 }
  0x30   : > { %p2768_p5 = por %p2767_p3, %p2766_p0 }
  0x31   : > { %p2762_p11 = pneg %p2761_p9 }
  0x33   : > { %p2769_p8 = pnand %p2768_p5, %p2762_p11 }
  0x35   : > { %2772 = shalt.err (!%p2769_p8)
}
  0x36   : > { %s2892_s22 = smov 192   ;;  %s2893_s28 = smov 12  }
  0x37   : > { %2301 = dma.hbm_to_vmem [thread:$0]  (!%p3027_p1), %s3581_s0, 1536, %s160_s30, [#allocation3], %s2892_s22, %s2892_s22, %s2893_s28  }
  0x38   : > { %s2786_s8 = scalar_lea.vmem %s207_s19, 80  ;;  %p3594_p12 = pneg %p2975_p7 }
  0x39   : > { %p2787_p13 = scmp.ne.s32.totalorder %s207_s19, %s2786_s8  ;;  %s2894_s9 = smov [#allocation7]  }
  0x3a   : > { %s2791_s11 = sshll.u32 %s2894_s9, 4  ;;  %s2792_s11 = int_to_ptr.vmem [resolvable:$false] %s2791_s11 }
  0x3b   : > { %p2789_p4 = pnand %p2787_p13, %p3594_p12  ;;  %s2793_s21 = scalar_lea.vmem %s2792_s11, 160 }
  0x3c   : > { %p2794_p8 = scmp.lt.s32.totalorder %s207_s19, %s2792_s11  ;;  %p2795_p5 = scmp.lt.s32.totalorder %s2793_s21, %s2786_s8 }
  0x3d   : > { %p2790_p6 = pneg %p2789_p4 }
  0x3e   : > { %p2796_p9 = por %p2795_p5, %p2794_p8 }
  0x40   : > { %p2797_p11 = pnand %p2796_p9, %p2790_p6 }
  0x42   : > { %2800 = shalt.err (!%p2797_p11)
}
  0x43   : > { %2308 = dma.hbm_to_vmem [thread:$0]  (!%p2975_p7), %s3034_s10, 80, %s207_s19, %s2979_s5  }
  0x44   : > { %215 = sbr.rel (%p3016_p2) target bundleno = 488 (0x1e8), region = 32  ;;  %p3595_p12 = scmp.eq.s32.totalorder (!%p3016_p2), %s2990_s20, 0 }
  0x49   : > { %2852 = dma.done.wait (%p3595_p12), [#allocation3], 1536   ;;  %p3596_p13 = pmov %p3595_p12 }
  0x4a   : > { %s221_s30 = sand.u32 1, %s2990_s20   ;;  %s3058_s7 = sand.u32 1, %s2869_s13  }
  0x4b   : > { %2854 = vsyncadd (%p3596_p13), [#allocation3], 4294965760  ;;  %s2285_s29 = smul.u32 960, %s3058_s7  ;;  %s222_s22 = scalar_lea.sflag [#allocation6], %s221_s30 }
  0x4d   : > { %s3061_s28 = scalar_lea.vmem [#allocation5], %s2285_s29 }
  0x4e   : > { %2856 = dma.done.wait (%p2999_p10), %s222_s22, 15440  }
  0x4f   : > { %2858 = vsyncadd (%p2999_p10), %s222_s22, 4294951856  ;;  %v2895_v0 = vmov 0   ;;  %v2375_v1 = vld [vmem:[%s3061_s28 + $0x11c] ss:$20 sps:$4 sm:$0xff]   ;;  %v2379_v3 = vld [vmem:[%s3061_s28 + $0x118] ss:$20 sps:$4 sm:$0xff]  }
  0x50   : > { %1248 = vmatprep.mubr.bf16.mxu1 %v2895_v0  ;;  %v2377_v2 = vld [vmem:[%s3061_s28 + $0x39c] ss:$20 sps:$4 sm:$0xff]   ;;  %1143 = vmatprep.subr.bf16.mxu0 %v2375_v1  ;;  %v2380_v4 = vld [vmem:[%s3061_s28 + $0x398] ss:$20 sps:$4 sm:$0xff]   ;;  %v2381_v5 = vld [vmem:[%s3061_s28 + $0xf4] ss:$20 sps:$4 sm:$0xff]  }
  0x51   : > { %1216 = vmatprep.subr.bf16.mxu1 %v2377_v2  ;;  %1144 = vmatpush1.bf16.msra.mxu0 %v2379_v3  ;;  %v2383_v6 = vld [vmem:[%s3061_s28 + $0x374] ss:$20 sps:$4 sm:$0xff]   ;;  %v2385_v7 = vld [vmem:[%s3061_s28 + $0xf0] ss:$20 sps:$4 sm:$0xff]   ;;  %v2387_v9 = vld [vmem:[%s3061_s28 + $0xcc] ss:$20 sps:$4 sm:$0xff]  }
  0x52   : > { %1217 = vmatpush1.bf16.msra.mxu1 %v2380_v4  ;;  %1145 = vmatprep.subr.bf16.mxu0 %v2381_v5  ;;  %v2386_v8 = vld [vmem:[%s3061_s28 + $0x370] ss:$20 sps:$4 sm:$0xff]   ;;  %v2389_v10 = vld [vmem:[%s3061_s28 + $0x34c] ss:$20 sps:$4 sm:$0xff]   ;;  %v2391_v11 = vld [vmem:[%s3061_s28 + $0xc8] ss:$20 sps:$4 sm:$0xff]  }
  0x53   : > { %1218 = vmatprep.subr.bf16.mxu1 %v2383_v6  ;;  %v2392_v12 = vld [vmem:[%s3061_s28 + $0x348] ss:$20 sps:$4 sm:$0xff]   ;;  %v2393_v13 = vld [vmem:[%s3061_s28 + $0xa4] ss:$20 sps:$4 sm:$0xff]   ;;  %v2397_v15 = vld [vmem:[%s3061_s28 + $0xa0] ss:$20 sps:$4 sm:$0xff]  }
  0x54   : > { %v2395_v14 = vld [vmem:[%s3061_s28 + $0x324] ss:$20 sps:$4 sm:$0xff]   ;;  %v2398_v16 = vld [vmem:[%s3061_s28 + $0x320] ss:$20 sps:$4 sm:$0xff]   ;;  %v2399_v17 = vld [vmem:[%s3061_s28 + $0x7c] ss:$20 sps:$4 sm:$0xff]  }
  0x55   : > { %1146 = vmatpush1.bf16.msra.mxu0 %v2385_v7  ;;  %v2401_v18 = vld [vmem:[%s3061_s28 + $0x2fc] ss:$20 sps:$4 sm:$0xff]   ;;  %v2403_v19 = vld [vmem:[%s3061_s28 + $0x78] ss:$20 sps:$4 sm:$0xff]   ;;  %v2405_v21 = vld [vmem:[%s3061_s28 + $0x54] ss:$20 sps:$4 sm:$0xff]  }
  0x56   : > { %1219 = vmatpush1.bf16.msra.mxu1 %v2386_v8  ;;  %1147 = vmatprep.subr.bf16.mxu0 %v2387_v9  ;;  %v2404_v20 = vld [vmem:[%s3061_s28 + $0x2f8] ss:$20 sps:$4 sm:$0xff]   ;;  %v2407_v22 = vld [vmem:[%s3061_s28 + $0x2d4] ss:$20 sps:$4 sm:$0xff]   ;;  %v2409_v23 = vld [vmem:[%s3061_s28 + $0x50] ss:$20 sps:$4 sm:$0xff]  }
  0x57   : > { %1220 = vmatprep.subr.bf16.mxu1 %v2389_v10  ;;  %v2410_v24 = vld [vmem:[%s3061_s28 + $0x2d0] ss:$20 sps:$4 sm:$0xff]   ;;  %v2411_v25 = vld [vmem:[%s3061_s28 + $0x2c] ss:$20 sps:$4 sm:$0xff]   ;;  %v2415_v27 = vld [vmem:[%s3061_s28 + $0x28] ss:$20 sps:$4 sm:$0xff]  }
  0x58   : > { %v2413_v26 = vld [vmem:[%s3061_s28 + $0x2ac] ss:$20 sps:$4 sm:$0xff]   ;;  %v2416_v28 = vld [vmem:[%s3061_s28 + $0x2a8] ss:$20 sps:$4 sm:$0xff]   ;;  %v2417_v29 = vld [vmem:[%s3061_s28 + $0x4] ss:$20 sps:$4 sm:$0xff]  }
  0x59   : > { %1148 = vmatpush1.bf16.msra.mxu0 %v2391_v11  ;;  %v2419_v30 = vld [vmem:[%s3061_s28 + $0x284] ss:$20 sps:$4 sm:$0xff]   ;;  %v2421_v31 = vld [vmem:[%s3061_s28] ss:$20 sps:$4 sm:$0xff]   ;;  %v2423_v33 = vld [vmem:[%s3061_s28 + $0x25c] ss:$20 sps:$4 sm:$0xff]  }
  0x5a   : > { %1221 = vmatpush1.bf16.msra.mxu1 %v2392_v12  ;;  %1149 = vmatprep.subr.bf16.mxu0 %v2393_v13  ;;  %v2422_v32 = vld [vmem:[%s3061_s28 + $0x280] ss:$20 sps:$4 sm:$0xff]   ;;  %v2427_v34 = vld [vmem:[%s3061_s28 + $0x124] ss:$20 sps:$4 sm:$0xff]   ;;  %v2434_v39 = vld [vmem:[%s3061_s28 + $0xfc] ss:$20 sps:$4 sm:$0xff]  }
  0x5b   : > { %1222 = vmatprep.subr.bf16.mxu1 %v2395_v14  ;;  %v3102_v35 = vld [vmem:[#allocation2 + $0x8] ss:$12 sps:$4 sm:$0xff]   ;;  %v2428_v37 = vld [vmem:[%s3061_s28 + $0x258] ss:$20 sps:$4 sm:$0xff]   ;;  %v2435_v41 = vld [vmem:[%s3061_s28 + $0x230] ss:$20 sps:$4 sm:$0xff]  }
  0x5c   : > { %v2425_v36 = vld [vmem:[%s3061_s28 + $0x120] ss:$20 sps:$4 sm:$0xff]   ;;  %v2432_v40 = vld [vmem:[%s3061_s28 + $0xf8] ss:$20 sps:$4 sm:$0xff]   ;;  %v2438_v44 = vld [vmem:[%s3061_s28 + $0xd0] ss:$20 sps:$4 sm:$0xff]  }
  0x5d   : > { %1150 = vmatpush1.bf16.msra.mxu0 %v2397_v15  ;;  %v2430_v38 = vld [vmem:[%s3061_s28 + $0x234] ss:$20 sps:$4 sm:$0xff]   ;;  %v2436_v42 = vld [vmem:[%s3061_s28 + $0x20c] ss:$20 sps:$4 sm:$0xff]   ;;  %v2442_v46 = vld [vmem:[%s3061_s28 + $0x1e4] ss:$20 sps:$4 sm:$0xff]  }
  0x5e   : > { %1223 = vmatpush1.bf16.msra.mxu1 %v2398_v16  ;;  %1151 = vmatprep.subr.bf16.mxu0 %v2399_v17  ;;  %v2440_v43 = vld [vmem:[%s3061_s28 + $0xd4] ss:$20 sps:$4 sm:$0xff]   ;;  %v2446_v47 = vld [vmem:[%s3061_s28 + $0xac] ss:$20 sps:$4 sm:$0xff]   ;;  %v2448_v50 = vld [vmem:[%s3061_s28 + $0x1bc] ss:$20 sps:$4 sm:$0xff]  }
  0x5f   : > { %1224 = vmatprep.subr.bf16.mxu1 %v2401_v18  ;;  %v2441_v45 = vld [vmem:[%s3061_s28 + $0x208] ss:$20 sps:$4 sm:$0xff]   ;;  %v2447_v49 = vld [vmem:[%s3061_s28 + $0x1e0] ss:$20 sps:$4 sm:$0xff]   ;;  %v3121_v51 = vld [vmem:[#allocation2 + $0x4] ss:$12 sps:$4 sm:$0xff]  }
  0x60   : > { %v2444_v48 = vld [vmem:[%s3061_s28 + $0xa8] ss:$20 sps:$4 sm:$0xff]   ;;  %v2452_v52 = vld [vmem:[%s3061_s28 + $0x84] ss:$20 sps:$4 sm:$0xff]   ;;  %1175 = vmatprep.mubr.bf16.mxu0 %v3121_v51  ;;  %v2450_v53 = vld [vmem:[%s3061_s28 + $0x80] ss:$20 sps:$4 sm:$0xff]  }
  0x61   : > { %1152 = vmatpush1.bf16.msra.mxu0 %v2403_v19  ;;  %v2453_v54 = vld [vmem:[%s3061_s28 + $0x1b8] ss:$20 sps:$4 sm:$0xff]   ;;  %v2454_v55 = vld [vmem:[%s3061_s28 + $0x194] ss:$20 sps:$4 sm:$0xff]   ;;  %v2458_v56 = vld [vmem:[%s3061_s28 + $0x5c] ss:$20 sps:$4 sm:$0xff]  }
  0x62   : > { %1225 = vmatpush1.bf16.msra.mxu1 %v2404_v20  ;;  %1153 = vmatprep.subr.bf16.mxu0 %v2405_v21  ;;  %v2456_v57 = vld [vmem:[%s3061_s28 + $0x58] ss:$20 sps:$4 sm:$0xff]   ;;  %v2459_v58 = vld [vmem:[%s3061_s28 + $0x190] ss:$20 sps:$4 sm:$0xff]   ;;  %v2464_v61 = vld [vmem:[%s3061_s28 + $0x34] ss:$20 sps:$4 sm:$0xff]  }
  0x63   : > { %1226 = vmatprep.subr.bf16.mxu1 %v2407_v22  ;;  %v3131_v59 = vld [vmem:[#allocation2 + $0x20] ss:$12 sps:$4 sm:$0xff]   ;;  %v2462_v62 = vld [vmem:[%s3061_s28 + $0x30] ss:$20 sps:$4 sm:$0xff]   ;;  %v2465_v63 = vld [vmem:[%s3061_s28 + $0x168] ss:$20 sps:$4 sm:$0xff]  }
  0x64   : > { %v2460_v60 = vld [vmem:[%s3061_s28 + $0x16c] ss:$20 sps:$4 sm:$0xff]   ;;  %v2466_v1 = vld [vmem:[%s3061_s28 + $0x144] ss:$20 sps:$4 sm:$0xff]   ;;  %v2468_v3 = vld [vmem:[%s3061_s28 + $0x8] ss:$20 sps:$4 sm:$0xff]  }
  0x65   : > { %1154 = vmatpush1.bf16.msra.mxu0 %v2409_v23  ;;  %v2470_v2 = vld [vmem:[%s3061_s28 + $0xc] ss:$20 sps:$4 sm:$0xff]   ;;  %v3143_v5 = vld [vmem:[#allocation2 + $0x38] ss:$12 sps:$4 sm:$0xff]   ;;  %v2483_v11 = vld [vmem:[%s3061_s28 + $0x23c] ss:$20 sps:$4 sm:$0xff]  }
  0x66   : > { %1227 = vmatpush1.bf16.msra.mxu1 %v2410_v24  ;;  %1155 = vmatprep.subr.bf16.mxu0 %v2411_v25  ;;  %v2471_v4 = vld [vmem:[%s3061_s28 + $0x140] ss:$20 sps:$4 sm:$0xff]   ;;  %v2477_v6 = vld [vmem:[%s3061_s28 + $0x264] ss:$20 sps:$4 sm:$0xff]   ;;  %v2486_v12 = vld [vmem:[%s3061_s28 + $0x37c] ss:$20 sps:$4 sm:$0xff]  }
  0x67   : > { %1228 = vmatprep.subr.bf16.mxu1 %v2413_v26  ;;  %v2480_v7 = vld [vmem:[%s3061_s28 + $0x3a4] ss:$20 sps:$4 sm:$0xff]   ;;  %v3147_v8 = vld [vmem:[#allocation2] ss:$12 sps:$4 sm:$0xff]   ;;  %v3157_v15 = vld [vmem:[#allocation2 + $0x1c] ss:$12 sps:$4 sm:$0xff]  }
  0x68   : > { %v2475_v9 = vld [vmem:[%s3061_s28 + $0x260] ss:$20 sps:$4 sm:$0xff]   ;;  %v2481_v13 = vld [vmem:[%s3061_s28 + $0x238] ss:$20 sps:$4 sm:$0xff]   ;;  %v3160_v16 = vld [vmem:[#allocation2 + $0x50] ss:$12 sps:$4 sm:$0xff]  }
  0x69   : > { %1156 = vmatpush1.bf16.msra.mxu0 %v2415_v27  ;;  %v2478_v10 = vld [vmem:[%s3061_s28 + $0x3a0] ss:$20 sps:$4 sm:$0xff]   ;;  %v2484_v14 = vld [vmem:[%s3061_s28 + $0x378] ss:$20 sps:$4 sm:$0xff]   ;;  %v2491_v20 = vld [vmem:[%s3061_s28 + $0x210] ss:$20 sps:$4 sm:$0xff]  }
  0x6a   : > { %1229 = vmatpush1.bf16.msra.mxu1 %v2416_v28  ;;  %1157 = vmatprep.subr.bf16.mxu0 %v2417_v29  ;;  %v2493_v17 = vld [vmem:[%s3061_s28 + $0x214] ss:$20 sps:$4 sm:$0xff]   ;;  %v3165_v19 = vld [vmem:[#allocation2 + $0x18] ss:$12 sps:$4 sm:$0xff]   ;;  %v2499_v22 = vld [vmem:[%s3061_s28 + $0x1ec] ss:$20 sps:$4 sm:$0xff]  }
  0x6b   : > { %1230 = vmatprep.subr.bf16.mxu1 %v2419_v30  ;;  %v2496_v18 = vld [vmem:[%s3061_s28 + $0x354] ss:$20 sps:$4 sm:$0xff]   ;;  %v2494_v21 = vld [vmem:[%s3061_s28 + $0x350] ss:$20 sps:$4 sm:$0xff]   ;;  %v2502_v23 = vld [vmem:[%s3061_s28 + $0x32c] ss:$20 sps:$4 sm:$0xff]  }
  0x6c   : > { %v2497_v24 = vld [vmem:[%s3061_s28 + $0x1e8] ss:$20 sps:$4 sm:$0xff]   ;;  %v3174_v25 = vld [vmem:[#allocation2 + $0x34] ss:$12 sps:$4 sm:$0xff]   ;;  %v2509_v27 = vld [vmem:[%s3061_s28 + $0x1c4] ss:$20 sps:$4 sm:$0xff]  }
  0x6d   : > { %1158 = vmatpush1.bf16.msra.mxu0 %v2421_v31  ;;  %v2500_v26 = vld [vmem:[%s3061_s28 + $0x328] ss:$20 sps:$4 sm:$0xff]   ;;  %v2512_v29 = vld [vmem:[%s3061_s28 + $0x304] ss:$20 sps:$4 sm:$0xff]   ;;  %v2507_v30 = vld [vmem:[%s3061_s28 + $0x1c0] ss:$20 sps:$4 sm:$0xff]  }
  0x6e   : > { %1231 = vmatpush1.bf16.msra.mxu1 %v2422_v32  ;;  %1159 = vmatprep.subr.bf16.mxu0 %v2423_v33  ;;  %v3179_v28 = vld [vmem:[#allocation2 + $0x30] ss:$12 sps:$4 sm:$0xff]   ;;  %v2510_v31 = vld [vmem:[%s3061_s28 + $0x300] ss:$20 sps:$4 sm:$0xff]   ;;  %s2286_s5 = smul.u32 5, %s3058_s7  ;;  %s1886_s9 = scalar_lea.sflag [#allocation4], %s3058_s7 }
  0x6f   : > { %1289 = vmatprep.subr.bf16.mxu1 %v2427_v34  ;;  %v2515_v32 = vld [vmem:[%s3061_s28 + $0x19c] ss:$20 sps:$4 sm:$0xff]   ;;  %v2513_v34 = vld [vmem:[%s3061_s28 + $0x198] ss:$20 sps:$4 sm:$0xff]   ;;  %s2287_s23 = smul.u32 320, %s3058_s7  ;;  %p3597_p10 = scmp.ne.s32.totalorder %s3590_s25, 0 }
  0x70   : > { %v2518_v33 = vld [vmem:[%s3061_s28 + $0x2dc] ss:$20 sps:$4 sm:$0xff]   ;;  %s234_s20 = scalar_lea.vmem [#allocation7], %s2286_s5  ;;  %s2206_s10 = smul.u32 640, %s2877_s15 }
  0x71   : > { %1249 = vmatmul.mubr.bf16.vlgmr.msra.gmra.mxu1 %v3102_v35  ;;  %1160 = vmatpush2.bf16.msra.mxu0 %v2428_v37  ;;  %v2516_v37 = vld [vmem:[%s3061_s28 + $0x2d8] ss:$20 sps:$4 sm:$0xff]   ;;  %s3352_s27 = scalar_lea.vmem [#allocation8], %s2287_s23  ;;  %s2896_s15 = smov [#allocation8]  }
  0x72   : > { %1290 = vmatpush1.bf16.msra.mxu1 %v2425_v36  ;;  %1161 = vmatprep.subr.bf16.mxu0 %v2430_v38  ;;  %v3188_v36 = vld [vmem:[#allocation2 + $0x4c] ss:$12 sps:$4 sm:$0xff]   ;;  %v2525_v38 = vld [vmem:[%s3061_s28 + $0x174] ss:$20 sps:$4 sm:$0xff]   ;;  %s1902_s19 = sshll.u32 %s3352_s27, 4  ;;  %s3530_s8 = scalar_lea.hbm %s3584_s3, %s2206_s10  ;;  %s3532_s19 = int_to_ptr.vmem [resolvable:$true] %s1902_s19 }
  0x73   : > { %1291 = vmatprep.subr.bf16.mxu1 %v2434_v39  ;;  %1258 = vmatprep.mubr.bf16.mxu1 %v2895_v0  ;;  %v3193_v39 = vld [vmem:[#allocation2 + $0x48] ss:$12 sps:$4 sm:$0xff]   ;;  %s2801_s11 = scalar_lea.vmem %s3532_s19, 5120  ;;  %s2805_s21 = sshll.u32 %s2896_s15, 4  ;;  %s2806_s21 = int_to_ptr.vmem [resolvable:$false] %s2805_s21 }
  0x74   : > { %p2802_p7 = scmp.ne.s32.totalorder %s3532_s19, %s2801_s11  ;;  %s2807_s30 = scalar_lea.vmem %s2806_s21, 10240 }
  0x75   : > { %1162 = vmatpush2.bf16.msra.mxu0 %v2435_v41  ;;  %v2523_v41 = vld [vmem:[%s3061_s28 + $0x170] ss:$20 sps:$4 sm:$0xff]   ;;  %p2808_p0 = scmp.lt.s32.totalorder %s3532_s19, %s2806_s21  ;;  %p2809_p3 = scmp.lt.s32.totalorder %s2807_s30, %s2801_s11 }
  0x76   : > { %1292 = vmatpush1.bf16.msra.mxu1 %v2432_v40  ;;  %1163 = vmatprep.subr.bf16.mxu0 %v2436_v42  ;;  %v2528_v40 = vld [vmem:[%s3061_s28 + $0x2b4] ss:$20 sps:$4 sm:$0xff]   ;;  %v2526_v42 = vld [vmem:[%s3061_s28 + $0x2b0] ss:$20 sps:$4 sm:$0xff]   ;;  %p2803_p2 = pnand %p2802_p7, %p3597_p10 }
  0x77   : > { %1293 = vmatprep.subr.bf16.mxu1 %v2440_v43  ;;  %v2531_v43 = vld [vmem:[%s3061_s28 + $0x14c] ss:$20 sps:$4 sm:$0xff]   ;;  %p2810_p4 = por %p2809_p3, %p2808_p0 }
  0x78   : > { %p2804_p1 = pneg %p2803_p2 }
  0x79   : > { %1164 = vmatpush2.bf16.msra.mxu0 %v2441_v45  ;;  %1259 = vmatmul.mubr.bf16.gmra.mxu1 %v3131_v59  ;;  %v2529_v45 = vld [vmem:[%s3061_s28 + $0x148] ss:$20 sps:$4 sm:$0xff]  }
  0x7a   : > { %1294 = vmatpush1.bf16.msra.mxu1 %v2438_v44  ;;  %1165 = vmatprep.subr.bf16.mxu0 %v2442_v46  ;;  %v2534_v44 = vld [vmem:[%s3061_s28 + $0x28c] ss:$20 sps:$4 sm:$0xff]   ;;  %v2532_v46 = vld [vmem:[%s3061_s28 + $0x288] ss:$20 sps:$4 sm:$0xff]   ;;  %p2811_p6 = pnand %p2810_p4, %p2804_p1 }
  0x7b   : > { %1295 = vmatprep.subr.bf16.mxu1 %v2446_v47  ;;  %1268 = vmatprep.mubr.bf16.mxu1 %v2895_v0  ;;  %v2535_v47 = vld [vmem:[%s3061_s28 + $0x268] ss:$20 sps:$4 sm:$0xff]  }
  0x7d   : > { %1166 = vmatpush2.bf16.msra.mxu0 %v2447_v49  ;;  %v2536_v49 = vld [vmem:[%s3061_s28 + $0x128] ss:$20 sps:$4 sm:$0xff]  }
  0x7e   : > { %1296 = vmatpush1.bf16.msra.mxu1 %v2444_v48  ;;  %1167 = vmatprep.subr.bf16.mxu0 %v2448_v50  ;;  %v2538_v48 = vld [vmem:[%s3061_s28 + $0x3a8] ss:$20 sps:$4 sm:$0xff]   ;;  %v2537_v50 = vld [vmem:[%s3061_s28 + $0x240] ss:$20 sps:$4 sm:$0xff]  }
  0x7f   : > { %1297 = vmatprep.subr.bf16.mxu1 %v2452_v52  ;;  %v2541_v52 = vld [vmem:[%s3061_s28 + $0x380] ss:$20 sps:$4 sm:$0xff]  }
  0x81   : > { %1168 = vmatpush2.bf16.msra.mxu0 %v2453_v54  ;;  %1269 = vmatmul.mubr.bf16.gmra.mxu1 %v3143_v5  ;;  %v2540_v54 = vld [vmem:[%s3061_s28 + $0x218] ss:$20 sps:$4 sm:$0xff]  }
  0x82   : > { %1298 = vmatpush1.bf16.msra.mxu1 %v2450_v53  ;;  %1169 = vmatprep.subr.bf16.mxu0 %v2454_v55  ;;  %v2539_v53 = vld [vmem:[%s3061_s28 + $0x100] ss:$20 sps:$4 sm:$0xff]   ;;  %v2544_v55 = vld [vmem:[%s3061_s28 + $0x358] ss:$20 sps:$4 sm:$0xff]  }
  0x83   : > { %1299 = vmatprep.subr.bf16.mxu1 %v2458_v56  ;;  %1278 = vmatprep.mubr.bf16.mxu1 %v2895_v0  ;;  %v2542_v56 = vld [vmem:[%s3061_s28 + $0xd8] ss:$20 sps:$4 sm:$0xff]  }
  0x85   : > { %1170 = vmatpush2.bf16.msra.mxu0 %v2459_v58  ;;  %v2547_v58 = vld [vmem:[%s3061_s28 + $0x330] ss:$20 sps:$4 sm:$0xff]  }
  0x86   : > { %1300 = vmatpush1.bf16.msra.mxu1 %v2456_v57  ;;  %1171 = vmatprep.subr.bf16.mxu0 %v2460_v60  ;;  %v2543_v57 = vld [vmem:[%s3061_s28 + $0x1f0] ss:$20 sps:$4 sm:$0xff]  }
  0x87   : > { %1301 = vmatprep.subr.bf16.mxu1 %v2464_v61  ;;  %v2545_v60 = vld [vmem:[%s3061_s28 + $0xb0] ss:$20 sps:$4 sm:$0xff]   ;;  %v2546_v61 = vld [vmem:[%s3061_s28 + $0x1c8] ss:$20 sps:$4 sm:$0xff]  }
  0x89   : > { %1172 = vmatpush2.bf16.msra.mxu0 %v2465_v63  ;;  %1279 = vmatmul.mubr.bf16.gmra.mxu1 %v3160_v16  ;;  %v2548_v63 = vld [vmem:[%s3061_s28 + $0x88] ss:$20 sps:$4 sm:$0xff]  }
  0x8a   : > { %1302 = vmatpush1.bf16.msra.mxu1 %v2462_v62  ;;  %1173 = vmatprep.subr.bf16.mxu0 %v2466_v1  ;;  %v2550_v62 = vld [vmem:[%s3061_s28 + $0x308] ss:$20 sps:$4 sm:$0xff]   ;;  %v2549_v1 = vld [vmem:[%s3061_s28 + $0x1a0] ss:$20 sps:$4 sm:$0xff]  }
  0x8b   : > { %1303 = vmatprep.subr.bf16.mxu1 %v2470_v2  ;;  %1321 = vmatprep.mubr.bf16.mxu1 %v3121_v51  ;;  %v2553_v2 = vld [vmem:[%s3061_s28 + $0x2e0] ss:$20 sps:$4 sm:$0xff]  }
  0x8d   : > { %1174 = vmatpush2.bf16.msra.mxu0 %v2471_v4  ;;  %v2552_v4 = vld [vmem:[%s3061_s28 + $0x178] ss:$20 sps:$4 sm:$0xff]  }
  0x8e   : > { %1304 = vmatpush1.bf16.msra.mxu1 %v2468_v3  ;;  %1362 = vmatprep.subr.bf16.mxu0 %v2480_v7  ;;  %v2551_v3 = vld [vmem:[%s3061_s28 + $0x60] ss:$20 sps:$4 sm:$0xff]   ;;  %v2554_v7 = vld [vmem:[%s3061_s28 + $0x38] ss:$20 sps:$4 sm:$0xff]  }
  0x8f   : > { %1305 = vmatprep.subr.bf16.mxu1 %v2477_v6  ;;  %v2556_v6 = vld [vmem:[%s3061_s28 + $0x2b8] ss:$20 sps:$4 sm:$0xff]  }
  0x90   : > { %1176 = vmatmul.mubr.bf16.vlgmr.msra.gmra.mxu0 %v3147_v8 }
  0x91   : > { %1363 = vmatpush1.bf16.msra.mxu0 %v2478_v10  ;;  %1185 = vmatprep.mubr.bf16.mxu0 %v3157_v15  ;;  %v2558_v10 = vld [vmem:[%s3061_s28 + $0x290] ss:$20 sps:$4 sm:$0xff]  }
  0x92   : > { %1306 = vmatpush2.bf16.msra.mxu1 %v2475_v9  ;;  %1364 = vmatprep.subr.bf16.mxu0 %v2486_v12  ;;  %v2555_v9 = vld [vmem:[%s3061_s28 + $0x150] ss:$20 sps:$4 sm:$0xff]  }
  0x93   : > { %1307 = vmatprep.subr.bf16.mxu1 %v2483_v11  ;;  %v2557_v11 = vld [vmem:[%s3061_s28 + $0x10] ss:$20 sps:$4 sm:$0xff]  }
  0x95   : > { %1365 = vmatpush1.bf16.msra.mxu0 %v2484_v14 }
  0x96   : > { %1308 = vmatpush2.bf16.msra.mxu1 %v2481_v13  ;;  %1366 = vmatprep.subr.bf16.mxu0 %v2496_v18 }
  0x97   : > { %1309 = vmatprep.subr.bf16.mxu1 %v2493_v17 }
  0x98   : > { %1186 = vmatmul.mubr.bf16.gmra.mxu0 %v3165_v19 }
  0x99   : > { %1367 = vmatpush1.bf16.msra.mxu0 %v2494_v21  ;;  %1195 = vmatprep.mubr.bf16.mxu0 %v3174_v25 }
  0x9a   : > { %1310 = vmatpush2.bf16.msra.mxu1 %v2491_v20  ;;  %1368 = vmatprep.subr.bf16.mxu0 %v2502_v23 }
  0x9b   : > { %1311 = vmatprep.subr.bf16.mxu1 %v2499_v22 }
  0x9d   : > { %1369 = vmatpush1.bf16.msra.mxu0 %v2500_v26 }
  0x9e   : > { %1312 = vmatpush2.bf16.msra.mxu1 %v2497_v24  ;;  %1370 = vmatprep.subr.bf16.mxu0 %v2512_v29 }
  0x9f   : > { %1313 = vmatprep.subr.bf16.mxu1 %v2509_v27 }
  0xa0   : > { %1196 = vmatmul.mubr.bf16.gmra.mxu0 %v3179_v28 }
  0xa1   : > { %1371 = vmatpush1.bf16.msra.mxu0 %v2510_v31  ;;  %1205 = vmatprep.mubr.bf16.mxu0 %v3188_v36 }
  0xa2   : > { %1314 = vmatpush2.bf16.msra.mxu1 %v2507_v30  ;;  %1372 = vmatprep.subr.bf16.mxu0 %v2518_v33 }
  0xa3   : > { %1315 = vmatprep.subr.bf16.mxu1 %v2515_v32 }
  0xa5   : > { %1373 = vmatpush1.bf16.msra.mxu0 %v2516_v37 }
  0xa6   : > { %1316 = vmatpush2.bf16.msra.mxu1 %v2513_v34  ;;  %1374 = vmatprep.subr.bf16.mxu0 %v2528_v40 }
  0xa7   : > { %1317 = vmatprep.subr.bf16.mxu1 %v2525_v38 }
  0xa8   : > { %1206 = vmatmul.mubr.bf16.gmra.mxu0 %v3193_v39 }
  0xa9   : > { %1375 = vmatpush1.bf16.msra.mxu0 %v2526_v42  ;;  %1394 = vmatprep.mubr.bf16.mxu0 %v2895_v0 }
  0xaa   : > { %1318 = vmatpush2.bf16.msra.mxu1 %v2523_v41  ;;  %1376 = vmatprep.subr.bf16.mxu0 %v2534_v44 }
  0xab   : > { %1319 = vmatprep.subr.bf16.mxu1 %v2531_v43 }
  0xad   : > { %1377 = vmatpush1.bf16.msra.mxu0 %v2532_v46 }
  0xae   : > { %1320 = vmatpush2.bf16.msra.mxu1 %v2529_v45  ;;  %2207 = vmatprep.subr.bf16.mxu0 %v2535_v47 }
  0xaf   : > { %2259 = vmatprep.subr.bf16.mxu1 %v2538_v48 }
  0xb0   : > { %1395 = vmatmul.mubr.bf16.vlgmr.msra.gmra.mxu0 %v3102_v35 }
  0xb1   : > { %1322 = vmatmul.mubr.bf16.vlgmr.msra.gmra.mxu1 %v3147_v8  ;;  %2208 = vmatpush3.bf16.msra.mxu0 %v2536_v49 }
  0xb2   : > { %2260 = vmatpush3.bf16.msra.mxu1 %v2538_v48  ;;  %2209 = vmatprep.subr.bf16.mxu0 %v2537_v50 }
  0xb3   : > { %1331 = vmatprep.mubr.bf16.mxu1 %v3157_v15  ;;  %1404 = vmatprep.mubr.bf16.mxu0 %v2895_v0 }
  0xb4   : > { %2261 = vmatprep.subr.bf16.mxu1 %v2541_v52 }
  0xb5   : > { %2210 = vmatpush3.bf16.msra.mxu0 %v2539_v53 }
  0xb6   : > { %2262 = vmatpush3.bf16.msra.mxu1 %v2541_v52  ;;  %2211 = vmatprep.subr.bf16.mxu0 %v2540_v54 }
  0xb7   : > { %2263 = vmatprep.subr.bf16.mxu1 %v2544_v55 }
  0xb8   : > { %1405 = vmatmul.mubr.bf16.gmra.mxu0 %v3131_v59 }
  0xb9   : > { %1332 = vmatmul.mubr.bf16.gmra.mxu1 %v3165_v19  ;;  %2212 = vmatpush3.bf16.msra.mxu0 %v2542_v56 }
  0xba   : > { %2264 = vmatpush3.bf16.msra.mxu1 %v2544_v55  ;;  %2213 = vmatprep.subr.bf16.mxu0 %v2543_v57 }
  0xbb   : > { %1341 = vmatprep.mubr.bf16.mxu1 %v3174_v25  ;;  %1414 = vmatprep.mubr.bf16.mxu0 %v2895_v0 }
  0xbc   : > { %2265 = vmatprep.subr.bf16.mxu1 %v2547_v58 }
  0xbd   : > { %2214 = vmatpush3.bf16.msra.mxu0 %v2545_v60 }
  0xbe   : > { %2266 = vmatpush3.bf16.msra.mxu1 %v2547_v58  ;;  %2215 = vmatprep.subr.bf16.mxu0 %v2546_v61 }
  0xbf   : > { %2267 = vmatprep.subr.bf16.mxu1 %v2550_v62 }
  0xc0   : > { %1415 = vmatmul.mubr.bf16.gmra.mxu0 %v3143_v5 }
  0xc1   : > { %1342 = vmatmul.mubr.bf16.gmra.mxu1 %v3179_v28  ;;  %2216 = vmatpush3.bf16.msra.mxu0 %v2548_v63 }
  0xc2   : > { %2268 = vmatpush3.bf16.msra.mxu1 %v2550_v62  ;;  %2217 = vmatprep.subr.bf16.mxu0 %v2549_v1 }
  0xc3   : > { %1351 = vmatprep.mubr.bf16.mxu1 %v3188_v36  ;;  %1424 = vmatprep.mubr.bf16.mxu0 %v2895_v0 }
  0xc4   : > { %2269 = vmatprep.subr.bf16.mxu1 %v2553_v2 }
  0xc5   : > { %2218 = vmatpush3.bf16.msra.mxu0 %v2551_v3 }
  0xc6   : > { %2270 = vmatpush3.bf16.msra.mxu1 %v2553_v2  ;;  %2219 = vmatprep.subr.bf16.mxu0 %v2552_v4 }
  0xc7   : > { %2271 = vmatprep.subr.bf16.mxu1 %v2556_v6 }
  0xc8   : > { %1425 = vmatmul.mubr.bf16.gmra.mxu0 %v3160_v16 }
  0xc9   : > { %1352 = vmatmul.mubr.bf16.gmra.mxu1 %v3193_v39  ;;  %2220 = vmatpush3.bf16.msra.mxu0 %v2554_v7 }
  0xca   : > { %2272 = vmatpush3.bf16.msra.mxu1 %v2556_v6  ;;  %2221 = vmatprep.subr.bf16.mxu0 %v2555_v9 }
  0xcb   : > { %1467 = vmatprep.mubr.bf16.mxu0 %v3121_v51  ;;  %2273 = vmatprep.subr.bf16.mxu1 %v2558_v10 }
  0xcc   : > { %2275 = vmatprep.mubr.bf16.mxu1 %v3102_v35 }
  0xcd   : > { %2222 = vmatpush3.bf16.msra.mxu0 %v2557_v11 }
  0xce   : > { %2274 = vmatpush3.bf16.msra.mxu1 %v2558_v10 }
  0xd0   : > { %1468 = vmatmul.mubr.bf16.vlgmr.msra.gmra.mxu0 %v3147_v8  ;;  %v430_v8 = vlaneseq }
  0xd1   : > { %2276 = vmatmul.mubr.bf16.vlgmr.msra.gmra.mxu1 %v3131_v59  ;;  %1475 = vmatprep.mubr.bf16.mxu0 %v3157_v15 }
  0xd2   : > { %2279 = vmatprep.mubr.bf16.mxu1 %v3143_v5  ;;  %v3256_v5 = vshrl.u32 %v430_v8, 7 }
  0xd4   : > { %v432_v15 = vsub.s32 0, %v3256_v5  ;;  %v436_v17 = vsub.s32 1, %v3256_v5 }
  0xd8   : > { %1476 = vmatmul.mubr.bf16.gmra.mxu0 %v3165_v19 }
  0xd9   : > { %2280 = vmatmul.mubr.bf16.gmra.mxu1 %v3160_v16  ;;  %1483 = vmatprep.mubr.bf16.mxu0 %v3174_v25  ;;  %v3259_v16 = vld [vmem:[%s234_s20] sm:$0x1f] }
  0xda   : > { %v3263_v19 = vrot.slane %v3259_v16, %v432_v15  ;;  %v3266_v20 = vrot.slane %v3259_v16, %v436_v17 }
  0xe0   : > { %1484 = vmatmul.mubr.bf16.gmra.mxu0 %v3179_v28 }
  0xe1   : > { %1491 = vmatprep.mubr.bf16.mxu0 %v3188_v36 }
  0xe8   : > { %1492 = vmatmul.mubr.bf16.gmra.mxu0 %v3193_v39 }
 0x131   : > { %v1250_v0 = vpop.f32.mrf.mxu1 }
 0x133   : > { %v1252_v35 = vpop.f32.mrf.mxu1 }
 0x135   : > { %v1254_v51 = vpop.f32.mrf.mxu1 }
 0x137   : > { %v1256_v59 = vpop.f32.mrf.mxu1 }
 0x139   : > { %v1260_v12 = vpop.f32.mrf.mxu1 }
 0x13b   : > { %v1262_v13 = vpop.f32.mrf.mxu1 }
 0x13d   : > { %v1264_v14 = vpop.f32.mrf.mxu1 }
 0x13f   : > { %v1266_v18 = vpop.f32.mrf.mxu1 }
 0x141   : > { %v1270_v22 = vpop.f32.mrf.mxu1 }
 0x143   : > { %v1272_v28 = vpop.f32.mrf.mxu1 }
 0x145   : > { %v1274_v38 = vpop.f32.mrf.mxu1 }
 0x147   : > { %v1276_v47 = vpop.f32.mrf.mxu1 }
 0x149   : > { %v1280_v57 = vpop.f32.mrf.mxu1 }
 0x14b   : > { %v1282_v6 = vpop.f32.mrf.mxu1 }
 0x14d   : > { %v1284_v15 = vpop.f32.mrf.mxu1 }
 0x150   : > { %v1177_v21 = vpop.f32.mrf.mxu0 }
 0x151   : > { %v1178_v23 = vadd.f32 %v1177_v21, %v3263_v19 }
 0x152   : > { %v1179_v24 = vpop.f32.mrf.mxu0 }
 0x153   : > { %v3269_v25 = vadd.f32 %v1250_v0, %v1178_v23  ;;  %v1180_v26 = vadd.f32 %v1179_v24, %v3266_v20 }
 0x154   : > { %v1181_v27 = vpop.f32.mrf.mxu0 }
 0x155   : > { %v2161_v29 = vmul.f32 -1.442695, %v3269_v25  ;;  %v3273_v30 = vadd.f32 %v1252_v35, %v1180_v26  ;;  %v1182_v31 = vadd.f32 %v1181_v27, %v3263_v19  ;;  %v440_v26 = vsub.s32 2, %v3256_v5 }
 0x156   : > { %v1183_v32 = vpop.f32.mrf.mxu0  ;;  %v444_v27 = vsub.s32 3, %v3256_v5 }
 0x157   : > { %2559 = vpow2.f32 %v2161_v29  ;;  %v2162_v33 = vmul.f32 -1.442695, %v3273_v30  ;;  %v3277_v34 = vadd.f32 %v1254_v51, %v1182_v31  ;;  %v1184_v36 = vadd.f32 %v1183_v32, %v3266_v20 }
 0x158   : > { %v1187_v37 = vpop.f32.mrf.mxu0 }
 0x159   : > { %2561 = vpow2.f32 %v2162_v33  ;;  %v2166_v39 = vmul.f32 -1.442695, %v3277_v34  ;;  %v3281_v40 = vadd.f32 %v1256_v59, %v1184_v36  ;;  %v1188_v41 = vadd.f32 %v1187_v37, %v3263_v19  ;;  %v1286_v37 = vpop.f32.mrf.mxu1 }
 0x15a   : > { %v1189_v42 = vpop.f32.mrf.mxu0 }
 0x15b   : > { %2563 = vpow2.f32 %v2166_v39  ;;  %v2167_v43 = vmul.f32 -1.442695, %v3281_v40  ;;  %v3285_v44 = vadd.f32 %v1260_v12, %v1188_v41  ;;  %v1190_v45 = vadd.f32 %v1189_v42, %v3266_v20 }
 0x15c   : > { %v1191_v46 = vpop.f32.mrf.mxu0 }
 0x15d   : > { %2565 = vpow2.f32 %v2167_v43  ;;  %v2171_v48 = vmul.f32 -1.442695, %v3285_v44  ;;  %v3289_v49 = vadd.f32 %v1262_v13, %v1190_v45  ;;  %v1192_v50 = vadd.f32 %v1191_v46, %v3263_v19 }
 0x15e   : > { %v1193_v52 = vpop.f32.mrf.mxu0  ;;  %v3327_v46 = vrot.slane %v3259_v16, %v440_v26 }
 0x15f   : > { %2567 = vpow2.f32 %v2171_v48  ;;  %v2172_v53 = vmul.f32 -1.442695, %v3289_v49  ;;  %v3293_v54 = vadd.f32 %v1264_v14, %v1192_v50  ;;  %v1194_v55 = vadd.f32 %v1193_v52, %v3266_v20 }
 0x160   : > { %v1197_v56 = vpop.f32.mrf.mxu0 }
 0x161   : > { %2569 = vpow2.f32 %v2172_v53  ;;  %v2176_v58 = vmul.f32 -1.442695, %v3293_v54  ;;  %v3297_v60 = vadd.f32 %v1266_v18, %v1194_v55  ;;  %v1198_v61 = vadd.f32 %v1197_v56, %v3263_v19 }
 0x162   : > { %v1199_v62 = vpop.f32.mrf.mxu0 }
 0x163   : > { %2571 = vpow2.f32 %v2176_v58  ;;  %v2177_v63 = vmul.f32 -1.442695, %v3297_v60  ;;  %v3301_v1 = vadd.f32 %v1270_v22, %v1198_v61  ;;  %v1200_v2 = vadd.f32 %v1199_v62, %v3266_v20 }
 0x164   : > { %v2560_v3 = vpop.eup %2559  ;;  %v1201_v4 = vpop.f32.mrf.mxu0 }
 0x165   : > { %v1685_v7 = vadd.f32 1.0, %v2560_v3  ;;  %2573 = vpow2.f32 %v2177_v63  ;;  %v2181_v9 = vmul.f32 -1.442695, %v3301_v1  ;;  %v3305_v10 = vadd.f32 %v1272_v28, %v1200_v2 }
 0x166   : > { %v2562_v11 = vpop.eup %2561  ;;  %v1202_v0 = vadd.f32 %v1201_v4, %v3263_v19  ;;  %v1203_v35 = vpop.f32.mrf.mxu0 }
 0x167   : > { %2575 = vrcp.f32 %v1685_v7  ;;  %v1686_v51 = vadd.f32 1.0, %v2562_v11  ;;  %v2182_v59 = vmul.f32 -1.442695, %v3305_v10  ;;  %v1204_v8 = vadd.f32 %v1203_v35, %v3266_v20 }
 0x168   : > { %v2564_v12 = vpop.eup %2563  ;;  %2577 = vpow2.f32 %v2181_v9  ;;  %v3310_v13 = vadd.f32 %v1274_v38, %v1202_v0  ;;  %v1207_v14 = vpop.f32.mrf.mxu0 }
 0x169   : > { %2579 = vrcp.f32 %v1686_v51  ;;  %v1690_v17 = vadd.f32 1.0, %v2564_v12  ;;  %v3312_v18 = vadd.f32 %v1276_v47, %v1204_v8  ;;  %v1208_v21 = vadd.f32 %v1207_v14, %v3263_v19 }
 0x16a   : > { %v2566_v22 = vpop.eup %2565  ;;  %2581 = vpow2.f32 %v2182_v59  ;;  %v2186_v23 = vmul.f32 -1.442695, %v3310_v13  ;;  %v1209_v24 = vpop.f32.mrf.mxu0  ;;  %v3330_v47 = vrot.slane %v3259_v16, %v444_v27 }
 0x16b   : > { %2583 = vrcp.f32 %v1690_v17  ;;  %v1691_v28 = vadd.f32 1.0, %v2566_v22  ;;  %v2187_v29 = vmul.f32 -1.442695, %v3312_v18  ;;  %v3319_v31 = vadd.f32 %v1280_v57, %v1208_v21 }
 0x16c   : > { %v2568_v32 = vpop.eup %2567  ;;  %2585 = vpow2.f32 %v2186_v23  ;;  %v1210_v33 = vadd.f32 %v1209_v24, %v3266_v20  ;;  %v1211_v36 = vpop.f32.mrf.mxu0 }
 0x16d   : > { %2587 = vrcp.f32 %v1691_v28  ;;  %v1695_v38 = vadd.f32 1.0, %v2568_v32  ;;  %v2191_v39 = vmul.f32 -1.442695, %v3319_v31  ;;  %v1212_v41 = vadd.f32 %v1211_v36, %v3263_v19 }
 0x16e   : > { %v2570_v42 = vpop.eup %2569  ;;  %2589 = vpow2.f32 %v2187_v29  ;;  %v3324_v43 = vadd.f32 %v1282_v6, %v1210_v33  ;;  %v1213_v45 = vpop.f32.mrf.mxu0 }
 0x16f   : > { %2591 = vrcp.f32 %v1695_v38  ;;  %v1696_v48 = vadd.f32 1.0, %v2570_v42  ;;  %v3332_v50 = vadd.f32 %v1284_v15, %v1212_v41  ;;  %v1214_v52 = vadd.f32 %v1213_v45, %v3266_v20 }
 0x170   : > { %v2572_v53 = vpop.eup %2571  ;;  %2593 = vpow2.f32 %v2191_v39  ;;  %v2192_v19 = vmul.f32 -1.442695, %v3324_v43  ;;  %v1396_v56 = vpop.f32.mrf.mxu0 }
 0x171   : > { %v1323_v55 = vpop.f32.mrf.mxu1  ;;  %2595 = vrcp.f32 %v1696_v48  ;;  %v1700_v57 = vadd.f32 1.0, %v2572_v53  ;;  %v2196_v58 = vmul.f32 -1.442695, %v3332_v50  ;;  %v3338_v61 = vadd.f32 %v1286_v37, %v1214_v52 }
 0x172   : > { %v2574_v62 = vpop.eup %2573  ;;  %2597 = vpow2.f32 %v2192_v19  ;;  %v1324_v63 = vadd.f32 %v1323_v55, %v3327_v46  ;;  %v1398_v3 = vpop.f32.mrf.mxu0 }
 0x173   : > { %v1325_v2 = vpop.f32.mrf.mxu1  ;;  %2599 = vrcp.f32 %v1700_v57  ;;  %v1701_v20 = vadd.f32 1.0, %v2574_v62  ;;  %v2197_v4 = vmul.f32 -1.442695, %v3338_v61 }
 0x174   : > { %v1326_v6 = vadd.f32 %v1325_v2, %v3330_v47  ;;  %v2576_v7 = vpop.eup %2575  ;;  %2601 = vpow2.f32 %v2196_v58  ;;  %v3343_v9 = vadd.f32 %v1396_v56, %v1324_v63  ;;  %v1400_v0 = vpop.f32.mrf.mxu0 }
 0x175   : > { %v1327_v11 = vpop.f32.mrf.mxu1  ;;  %v2578_v35 = vpop.eup %2577  ;;  %v1805_v51 = vmul.f32 %v2576_v7, %v3269_v25  ;;  %2603 = vrcp.f32 %v1701_v20 }
 0x176   : > { %v3346_v59 = vadd.f32 %v1398_v3, %v1326_v6  ;;  %v1328_v8 = vadd.f32 %v1327_v11, %v3327_v46  ;;  %v2580_v12 = vpop.eup %2579  ;;  %v1705_v14 = vadd.f32 1.0, %v2578_v35  ;;  %2605 = vpow2.f32 %v2197_v4  ;;  %v1402_v21 = vpop.f32.mrf.mxu0 }
 0x177   : > { %v2163_v15 = vmul.f32 -1.442695, %v3343_v9  ;;  %v1329_v17 = vpop.f32.mrf.mxu1  ;;  %v2582_v22 = vpop.eup %2581  ;;  %1845 = vst [vmem:[%s3352_s27] sm:$0xff] %v1805_v51  ;;  %v1806_v25 = vmul.f32 %v2580_v12, %v3273_v30 }
 0x178   : > { %v2164_v23 = vmul.f32 -1.442695, %v3346_v59  ;;  %v3357_v24 = vadd.f32 %v1400_v0, %v1328_v8  ;;  %v1330_v26 = vadd.f32 %v1329_v17, %v3330_v47  ;;  %v2584_v27 = vpop.eup %2583  ;;  %2607 = vrcp.f32 %v1705_v14  ;;  %v1406_v32 = vpop.f32.mrf.mxu0 }
 0x179   : > { %v1706_v28 = vadd.f32 1.0, %v2582_v22  ;;  %v1333_v29 = vpop.f32.mrf.mxu1  ;;  %v2586_v33 = vpop.eup %2585  ;;  %1846 = vst [vmem:[%s3352_s27 + $0x8] sm:$0xff] %v1806_v25  ;;  %v1810_v36 = vmul.f32 %v2584_v27, %v3277_v34  ;;  %2609 = vpow2.f32 %v2163_v15 }
 0x17a   : > { %v2168_v37 = vmul.f32 -1.442695, %v3357_v24  ;;  %v3363_v30 = vadd.f32 %v1402_v21, %v1330_v26  ;;  %v2588_v38 = vpop.eup %2587  ;;  %v1710_v39 = vadd.f32 1.0, %v2586_v33  ;;  %v1334_v41 = vadd.f32 %v1333_v29, %v3327_v46  ;;  %v1408_v45 = vpop.f32.mrf.mxu0 }
 0x17b   : > { %2611 = vrcp.f32 %v1706_v28  ;;  %v1335_v42 = vpop.f32.mrf.mxu1  ;;  %v2590_v48 = vpop.eup %2589  ;;  %1850 = vst [vmem:[%s3352_s27 + $0x28] sm:$0xff] %v1810_v36  ;;  %v1811_v52 = vmul.f32 %v2588_v38, %v3281_v40 }
 0x17c   : > { %2613 = vpow2.f32 %v2164_v23  ;;  %v2169_v34 = vmul.f32 -1.442695, %v3363_v30  ;;  %v1336_v53 = vadd.f32 %v1335_v42, %v3330_v47  ;;  %v2592_v19 = vpop.eup %2591  ;;  %v1711_v55 = vadd.f32 1.0, %v2590_v48  ;;  %v1410_v58 = vpop.f32.mrf.mxu0 }
 0x17d   : > { %2615 = vrcp.f32 %v1710_v39  ;;  %v3370_v56 = vadd.f32 %v1406_v32, %v1334_v41  ;;  %v1337_v57 = vpop.f32.mrf.mxu1  ;;  %v2594_v62 = vpop.eup %2593  ;;  %1851 = vst [vmem:[%s3352_s27 + $0x30] sm:$0xff] %v1811_v52  ;;  %v1815_v63 = vmul.f32 %v2592_v19, %v3285_v44 }
 0x17e   : > { %2617 = vpow2.f32 %v2168_v37  ;;  %v3374_v2 = vadd.f32 %v1408_v45, %v1336_v53  ;;  %v1338_v40 = vadd.f32 %v1337_v57, %v3327_v46  ;;  %v2596_v3 = vpop.eup %2595  ;;  %v1715_v20 = vadd.f32 1.0, %v2594_v62  ;;  %v1412_v7 = vpop.f32.mrf.mxu0 }
 0x17f   : > { %2619 = vrcp.f32 %v1711_v55  ;;  %v2173_v4 = vmul.f32 -1.442695, %v3370_v56  ;;  %v1339_v6 = vpop.f32.mrf.mxu1  ;;  %v2598_v11 = vpop.eup %2597  ;;  %1855 = vst [vmem:[%s3352_s27 + $0x50] sm:$0xff] %v1815_v63  ;;  %v1816_v0 = vmul.f32 %v2596_v3, %v3289_v49 }
 0x180   : > { %2621 = vpow2.f32 %v2169_v34  ;;  %v2174_v44 = vmul.f32 -1.442695, %v3374_v2  ;;  %v3381_v35 = vadd.f32 %v1410_v58, %v1338_v40  ;;  %v2600_v51 = vpop.eup %2599  ;;  %v1716_v8 = vadd.f32 1.0, %v2598_v11  ;;  %v1416_v15 = vpop.f32.mrf.mxu0 }
 0x181   : > { %2623 = vrcp.f32 %v1715_v20  ;;  %v1340_v12 = vadd.f32 %v1339_v6, %v3330_v47  ;;  %v1343_v14 = vpop.f32.mrf.mxu1  ;;  %v2602_v17 = vpop.eup %2601  ;;  %1856 = vst [vmem:[%s3352_s27 + $0x58] sm:$0xff] %v1816_v0  ;;  %v1820_v21 = vmul.f32 %v2600_v51, %v3293_v54 }
 0x182   : > { %2625 = vpow2.f32 %v2173_v4  ;;  %v2178_v49 = vmul.f32 -1.442695, %v3381_v35  ;;  %v1344_v22 = vadd.f32 %v1343_v14, %v3327_v46  ;;  %v2604_v25 = vpop.eup %2603  ;;  %v1720_v23 = vadd.f32 1.0, %v2602_v17  ;;  %v1418_v28 = vpop.f32.mrf.mxu0 }
 0x183   : > { %2627 = vrcp.f32 %v1716_v8  ;;  %v3388_v26 = vadd.f32 %v1412_v7, %v1340_v12  ;;  %v1345_v27 = vpop.f32.mrf.mxu1  ;;  %v2606_v29 = vpop.eup %2605  ;;  %1860 = vst [vmem:[%s3352_s27 + $0x78] sm:$0xff] %v1820_v21  ;;  %v1821_v32 = vmul.f32 %v2604_v25, %v3297_v60  ;;  %v448_v25 = vsub.s32 4, %v3256_v5 }
 0x184   : > { %2629 = vpow2.f32 %v2174_v44  ;;  %v3392_v33 = vadd.f32 %v1416_v15, %v1344_v22  ;;  %v1346_v54 = vadd.f32 %v1345_v27, %v3330_v47  ;;  %v1721_v36 = vadd.f32 1.0, %v2606_v29  ;;  %v1420_v39 = vpop.f32.mrf.mxu0 }
 0x185   : > { %2631 = vrcp.f32 %v1720_v23  ;;  %v2179_v37 = vmul.f32 -1.442695, %v3388_v26  ;;  %v1347_v38 = vpop.f32.mrf.mxu1  ;;  %v2608_v41 = vpop.eup %2607  ;;  %1861 = vst [vmem:[%s3352_s27 + $0x80] sm:$0xff] %v1821_v32 }
 0x186   : > { %2633 = vpow2.f32 %v2178_v49  ;;  %v2183_v42 = vmul.f32 -1.442695, %v3392_v33  ;;  %v3398_v45 = vadd.f32 %v1418_v28, %v1346_v54  ;;  %v1348_v60 = vadd.f32 %v1347_v38, %v3327_v46  ;;  %v2610_v48 = vpop.eup %2609  ;;  %v1422_v53 = vpop.f32.mrf.mxu0 }
 0x187   : > { %v1825_v52 = vmul.f32 %v2608_v41, %v3301_v1  ;;  %2635 = vrcp.f32 %v1721_v36  ;;  %v1349_v34 = vpop.f32.mrf.mxu1  ;;  %v1687_v55 = vadd.f32 1.0, %v2610_v48 }
 0x188   : > { %v2612_v19 = vpop.eup %2611  ;;  %2637 = vpow2.f32 %v2179_v37  ;;  %v2184_v57 = vmul.f32 -1.442695, %v3398_v45  ;;  %v3403_v58 = vadd.f32 %v1420_v39, %v1348_v60  ;;  %v1350_v40 = vadd.f32 %v1349_v34, %v3330_v47  ;;  %v1426_v1 = vpop.f32.mrf.mxu0 }
 0x189   : > { %v2614_v62 = vpop.eup %2613  ;;  %1865 = vst [vmem:[%s3352_s27 + $0xa0] sm:$0xff] %v1825_v52  ;;  %v1826_v63 = vmul.f32 %v2612_v19, %v3305_v10  ;;  %2639 = vpow2.f32 %v2183_v42  ;;  %v1353_v3 = vpop.f32.mrf.mxu1  ;;  %v3438_v19 = vrot.slane %v3259_v16, %v448_v25 }
 0x18a   : > { %v2616_v20 = vpop.eup %2615  ;;  %2641 = vrcp.f32 %v1687_v55  ;;  %v1688_v4 = vadd.f32 1.0, %v2614_v62  ;;  %v2188_v6 = vmul.f32 -1.442695, %v3403_v58  ;;  %v1354_v7 = vadd.f32 %v1353_v3, %v3327_v46  ;;  %v1428_v51 = vpop.f32.mrf.mxu0 }
 0x18b   : > { %v2618_v11 = vpop.eup %2617  ;;  %1866 = vst [vmem:[%s3352_s27 + $0xa8] sm:$0xff] %v1826_v63  ;;  %v1830_v0 = vmul.f32 %v2616_v20, %v3310_v13  ;;  %2643 = vpow2.f32 %v2184_v57  ;;  %v3412_v44 = vadd.f32 %v1422_v53, %v1350_v40  ;;  %v1355_v10 = vpop.f32.mrf.mxu1 }
 0x18c   : > { %v2620_v8 = vpop.eup %2619  ;;  %2645 = vrcp.f32 %v1688_v4  ;;  %v1692_v12 = vadd.f32 1.0, %v2618_v11  ;;  %v3414_v14 = vadd.f32 %v1426_v1, %v1354_v7  ;;  %v1356_v15 = vadd.f32 %v1355_v10, %v3330_v47  ;;  %v1430_v22 = vpop.f32.mrf.mxu0 }
 0x18d   : > { %v2622_v17 = vpop.eup %2621  ;;  %1870 = vst [vmem:[%s3352_s27 + $0xc8] sm:$0xff] %v1830_v0  ;;  %v1831_v21 = vmul.f32 %v2620_v8, %v3312_v18  ;;  %2647 = vpow2.f32 %v2188_v6  ;;  %v2189_v13 = vmul.f32 -1.442695, %v3412_v44  ;;  %v1357_v49 = vpop.f32.mrf.mxu1 }
 0x18e   : > { %v2624_v23 = vpop.eup %2623  ;;  %2649 = vrcp.f32 %v1692_v12  ;;  %v1693_v27 = vadd.f32 1.0, %v2622_v17  ;;  %v2193_v28 = vmul.f32 -1.442695, %v3414_v14  ;;  %v3422_v29 = vadd.f32 %v1428_v51, %v1356_v15  ;;  %v1432_v37 = vpop.f32.mrf.mxu0 }
 0x18f   : > { %v2626_v32 = vpop.eup %2625  ;;  %1871 = vst [vmem:[%s3352_s27 + $0xd0] sm:$0xff] %v1831_v21  ;;  %v1835_v54 = vmul.f32 %v2624_v23, %v3319_v31  ;;  %2651 = vpow2.f32 %v2189_v13  ;;  %v1358_v18 = vadd.f32 %v1357_v49, %v3327_v46  ;;  %v1359_v36 = vpop.f32.mrf.mxu1 }
 0x190   : > { %v2628_v38 = vpop.eup %2627  ;;  %2653 = vrcp.f32 %v1693_v27  ;;  %v1697_v5 = vadd.f32 1.0, %v2626_v32  ;;  %v2194_v39 = vmul.f32 -1.442695, %v3422_v29  ;;  %v1360_v41 = vadd.f32 %v1359_v36, %v3330_v47  ;;  %v2223_v31 = vpop.f32.mrf.mxu0 }
 0x191   : > { %v2630_v42 = vpop.eup %2629  ;;  %1875 = vst [vmem:[%s3352_s27 + $0xf0] sm:$0xff] %v1835_v54  ;;  %v1836_v60 = vmul.f32 %v2628_v38, %v3324_v43  ;;  %2655 = vpow2.f32 %v2193_v28  ;;  %v3431_v48 = vadd.f32 %v1430_v22, %v1358_v18  ;;  %v3433_v52 = vpop.f32.mrf.mxu1 }
 0x192   : > { %v2632_v46 = vpop.eup %2631  ;;  %2657 = vrcp.f32 %v1697_v5  ;;  %v1698_v34 = vadd.f32 1.0, %v2630_v42  ;;  %v3435_v53 = vadd.f32 %v1432_v37, %v1360_v41  ;;  %v2224_v57 = vpop.f32.mrf.mxu0 }
 0x193   : > { %v2634_v47 = vpop.eup %2633  ;;  %1876 = vst [vmem:[%s3352_s27 + $0xf8] sm:$0xff] %v1836_v60  ;;  %v1840_v55 = vmul.f32 %v2632_v46, %v3332_v50  ;;  %2659 = vpow2.f32 %v2194_v39  ;;  %v2198_v43 = vmul.f32 -1.442695, %v3431_v48  ;;  %v1534_v62 = vpop.f32.mrf.mxu1  ;;  %v2225_v1 = vadd.f32 %v2224_v57, %v2223_v31 }
 0x194   : > { %v2636_v63 = vpop.eup %2635  ;;  %2661 = vrcp.f32 %v1698_v34  ;;  %v1702_v40 = vadd.f32 1.0, %v2634_v47  ;;  %v2199_v3 = vmul.f32 -1.442695, %v3435_v53  ;;  %v2226_v4 = vpop.f32.mrf.mxu0 }
 0x195   : > { %v2638_v20 = vpop.eup %2637  ;;  %1880 = vst [vmem:[%s3352_s27 + $0x118] sm:$0xff] %v1840_v55  ;;  %v1841_v16 = vmul.f32 %v2636_v63, %v3338_v61  ;;  %2663 = vpow2.f32 %v2198_v43  ;;  %v3446_v6 = vpop.f32.mrf.mxu1  ;;  %v1470_v11 = vadd.f32 %v2225_v1, %v3438_v19 }
 0x196   : > { %v2640_v50 = vpop.eup %2639  ;;  %2665 = vrcp.f32 %v1702_v40  ;;  %v1703_v7 = vadd.f32 1.0, %v2638_v20  ;;  %v2227_v51 = vpop.f32.mrf.mxu0 }
 0x197   : > { %v2642_v0 = vpop.eup %2641  ;;  %1881 = vst [vmem:[%s3352_s27 + $0x120] sm:$0xff] %v1841_v16  ;;  %v1707_v10 = vadd.f32 1.0, %v2640_v50  ;;  %2667 = vpow2.f32 %v2199_v3  ;;  %v2228_v61 = vadd.f32 %v2227_v51, %v2226_v4  ;;  %v3451_v15 = vadd.f32 %v1534_v62, %v1470_v11  ;;  %v1537_v49 = vpop.f32.mrf.mxu1 }
 0x198   : > { %v2644_v8 = vpop.eup %2643  ;;  %v1807_v12 = vmul.f32 %v2642_v0, %v3343_v9  ;;  %2669 = vrcp.f32 %v1703_v7  ;;  %v2229_v13 = vpop.f32.mrf.mxu0 }
 0x199   : > { %v2646_v17 = vpop.eup %2645  ;;  %2671 = vrcp.f32 %v1707_v10  ;;  %v1708_v21 = vadd.f32 1.0, %v2644_v8  ;;  %v2165_v23 = vmul.f32 -1.442695, %v3451_v15  ;;  %v1473_v27 = vadd.f32 %v2228_v61, %v3438_v19  ;;  %v3461_v39 = vpop.f32.mrf.mxu1 }
 0x19a   : > { %v2648_v22 = vpop.eup %2647  ;;  %1847 = vst [vmem:[%s3352_s27 + $0x10] sm:$0xff] %v1807_v12  ;;  %v1808_v25 = vmul.f32 %v2646_v17, %v3346_v59  ;;  %v2230_v32 = vpop.f32.mrf.mxu0 }
 0x19b   : > { %v2650_v28 = vpop.eup %2649  ;;  %2673 = vrcp.f32 %v1708_v21  ;;  %v1712_v9 = vadd.f32 1.0, %v2648_v22  ;;  %v2231_v36 = vadd.f32 %v2230_v32, %v2229_v13  ;;  %v3459_v37 = vadd.f32 %v1537_v49, %v1473_v27  ;;  %v1550_v40 = vpop.f32.mrf.mxu1 }
 0x19c   : > { %v2652_v54 = vpop.eup %2651  ;;  %1848 = vst [vmem:[%s3352_s27 + $0x18] sm:$0xff] %v1808_v25  ;;  %v1812_v18 = vmul.f32 %v2650_v28, %v3357_v24  ;;  %2675 = vpow2.f32 %v2165_v23  ;;  %v2232_v5 = vpop.f32.mrf.mxu0 }
 0x19d   : > { %v2654_v38 = vpop.eup %2653  ;;  %2677 = vrcp.f32 %v1712_v9  ;;  %v1713_v59 = vadd.f32 1.0, %v2652_v54  ;;  %v1478_v60 = vadd.f32 %v2231_v36, %v3438_v19  ;;  %v2170_v31 = vmul.f32 -1.442695, %v3459_v37  ;;  %v2282_v8 = vpop.f32.mrf.mxu1 }
 0x19e   : > { %v2656_v41 = vpop.eup %2655  ;;  %1852 = vst [vmem:[%s3352_s27 + $0x38] sm:$0xff] %v1812_v18  ;;  %v1813_v42 = vmul.f32 %v2654_v38, %v3363_v30  ;;  %v2233_v34 = vpop.f32.mrf.mxu0 }
 0x19f   : > { %v2658_v24 = vpop.eup %2657  ;;  %2679 = vrcp.f32 %v1713_v59  ;;  %v1717_v46 = vadd.f32 1.0, %v2656_v41  ;;  %v3470_v43 = vadd.f32 %v3433_v52, %v1478_v60  ;;  %v2234_v57 = vadd.f32 %v2233_v34, %v2232_v5  ;;  %v1553_v27 = vpop.f32.mrf.mxu1 }
 0x1a0   : > { %v2660_v47 = vpop.eup %2659  ;;  %1853 = vst [vmem:[%s3352_s27 + $0x40] sm:$0xff] %v1813_v42  ;;  %v1817_v55 = vmul.f32 %v2658_v24, %v3370_v56  ;;  %2681 = vpow2.f32 %v2170_v31  ;;  %v2235_v63 = vpop.f32.mrf.mxu0 }
 0x1a1   : > { %v2662_v30 = vpop.eup %2661  ;;  %2683 = vrcp.f32 %v1717_v46  ;;  %v1718_v62 = vadd.f32 1.0, %v2660_v47  ;;  %v2175_v20 = vmul.f32 -1.442695, %v3470_v43  ;;  %v1481_v16 = vadd.f32 %v2234_v57, %v3438_v19 }
 0x1a2   : > { %v2664_v3 = vpop.eup %2663  ;;  %1857 = vst [vmem:[%s3352_s27 + $0x60] sm:$0xff] %v1817_v55  ;;  %v1818_v1 = vmul.f32 %v2662_v30, %v3374_v2  ;;  %v2236_v4 = vpop.f32.mrf.mxu0 }
 0x1a3   : > { %v2666_v56 = vpop.eup %2665  ;;  %2685 = vrcp.f32 %v1718_v62  ;;  %v1722_v52 = vadd.f32 1.0, %v2664_v3  ;;  %v3479_v11 = vadd.f32 %v3446_v6, %v1481_v16  ;;  %v2237_v0 = vadd.f32 %v2236_v4, %v2235_v63 }
 0x1a4   : > { %v2668_v50 = vpop.eup %2667  ;;  %1858 = vst [vmem:[%s3352_s27 + $0x68] sm:$0xff] %v1818_v1  ;;  %v1822_v7 = vmul.f32 %v2666_v56, %v3381_v35  ;;  %2687 = vpow2.f32 %v2175_v20  ;;  %v2238_v51 = vpop.f32.mrf.mxu0 }
 0x1a5   : > { %v2670_v2 = vpop.eup %2669  ;;  %2689 = vrcp.f32 %v1722_v52  ;;  %v1723_v10 = vadd.f32 1.0, %v2668_v50  ;;  %v2180_v17 = vmul.f32 -1.442695, %v3479_v11  ;;  %v1486_v35 = vadd.f32 %v2237_v0, %v3438_v19 }
 0x1a6   : > { %v2672_v12 = vpop.eup %2671  ;;  %1862 = vst [vmem:[%s3352_s27 + $0x88] sm:$0xff] %v1822_v7  ;;  %v1823_v61 = vmul.f32 %v2670_v2, %v3388_v26  ;;  %v2239_v6 = vpop.f32.mrf.mxu0 }
 0x1a7   : > { %v1827_v21 = vmul.f32 %v2672_v12, %v3392_v33  ;;  %2691 = vrcp.f32 %v1723_v10  ;;  %v2240_v49 = vadd.f32 %v2239_v6, %v2238_v51  ;;  %v3487_v22 = vadd.f32 %v1550_v40, %v1486_v35 }
 0x1a8   : > { %v2674_v13 = vpop.eup %2673  ;;  %1863 = vst [vmem:[%s3352_s27 + $0x90] sm:$0xff] %v1823_v61  ;;  %2693 = vpow2.f32 %v2180_v17  ;;  %v2241_v23 = vpop.f32.mrf.mxu0 }
 0x1a9   : > { %v2676_v25 = vpop.eup %2675  ;;  %1867 = vst [vmem:[%s3352_s27 + $0xb0] sm:$0xff] %v1827_v21  ;;  %v1828_v26 = vmul.f32 %v2674_v13, %v3398_v45  ;;  %v2185_v33 = vmul.f32 -1.442695, %v3487_v22  ;;  %v1489_v32 = vadd.f32 %v2240_v49, %v3438_v19 }
 0x1aa   : > { %v2678_v28 = vpop.eup %2677  ;;  %v1689_v9 = vadd.f32 1.0, %v2676_v25  ;;  %v2242_v18 = vpop.f32.mrf.mxu0 }
 0x1ab   : > { %1868 = vst [vmem:[%s3352_s27 + $0xb8] sm:$0xff] %v1828_v26  ;;  %v1832_v54 = vmul.f32 %v2678_v28, %v3403_v58  ;;  %v2243_v38 = vadd.f32 %v2242_v18, %v2241_v23  ;;  %v3495_v59 = vadd.f32 %v1553_v27, %v1489_v32 }
 0x1ac   : > { %v2680_v36 = vpop.eup %2679  ;;  %2695 = vrcp.f32 %v1689_v9  ;;  %v2244_v41 = vpop.f32.mrf.mxu0 }
 0x1ad   : > { %v2682_v5 = vpop.eup %2681  ;;  %1872 = vst [vmem:[%s3352_s27 + $0xd8] sm:$0xff] %v1832_v54  ;;  %v1833_v45 = vmul.f32 %v2680_v36, %v3412_v44  ;;  %2697 = vpow2.f32 %v2185_v33  ;;  %v1494_v31 = vadd.f32 %v2243_v38, %v3438_v19  ;;  %v2190_v24 = vmul.f32 -1.442695, %v3495_v59 }
 0x1ae   : > { %v2684_v42 = vpop.eup %2683  ;;  %v1694_v60 = vadd.f32 1.0, %v2682_v5  ;;  %v2245_v46 = vpop.f32.mrf.mxu0 }
 0x1af   : > { %1873 = vst [vmem:[%s3352_s27 + $0xe0] sm:$0xff] %v1833_v45  ;;  %v1837_v58 = vmul.f32 %v2684_v42, %v3414_v14  ;;  %v1559_v47 = vadd.f32 %v3461_v39, %v1494_v31  ;;  %v2246_v55 = vadd.f32 %v2245_v46, %v2244_v41 }
 0x1b0   : > { %v2686_v34 = vpop.eup %2685  ;;  %2699 = vrcp.f32 %v1694_v60 }
 0x1b1   : > { %v2688_v44 = vpop.eup %2687  ;;  %1877 = vst [vmem:[%s3352_s27 + $0x100] sm:$0xff] %v1837_v58  ;;  %v1838_v57 = vmul.f32 %v2686_v34, %v3422_v29  ;;  %2701 = vpow2.f32 %v2190_v24  ;;  %v2195_v63 = vmul.f32 -1.442695, %v1559_v47  ;;  %v1497_v40 = vadd.f32 %v2246_v55, %v3438_v19 }
 0x1b2   : > { %v2690_v30 = vpop.eup %2689  ;;  %v1699_v62 = vadd.f32 1.0, %v2688_v44 }
 0x1b3   : > { %1878 = vst [vmem:[%s3352_s27 + $0x108] sm:$0xff] %v1838_v57  ;;  %v1842_v14 = vmul.f32 %v2690_v30, %v3431_v48  ;;  %v1562_v39 = vadd.f32 %v2282_v8, %v1497_v40 }
 0x1b4   : > { %v2692_v3 = vpop.eup %2691  ;;  %2703 = vrcp.f32 %v1699_v62 }
 0x1b5   : > { %v2694_v1 = vpop.eup %2693  ;;  %1882 = vst [vmem:[%s3352_s27 + $0x128] sm:$0xff] %v1842_v14  ;;  %v1843_v20 = vmul.f32 %v2692_v3, %v3435_v53  ;;  %2705 = vpow2.f32 %v2195_v63  ;;  %v2200_v16 = vmul.f32 -1.442695, %v1562_v39 }
 0x1b6   : > { %v1704_v29 = vadd.f32 1.0, %v2694_v1 }
 0x1b7   : > { %1883 = vst [vmem:[%s3352_s27 + $0x130] sm:$0xff] %v1843_v20 }
 0x1b8   : > { %2707 = vrcp.f32 %v1704_v29 }
 0x1b9   : > { %v2696_v56 = vpop.eup %2695  ;;  %2709 = vpow2.f32 %v2200_v16 }
 0x1ba   : > { %v2698_v19 = vpop.eup %2697  ;;  %v1809_v48 = vmul.f32 %v2696_v56, %v3451_v15 }
 0x1bb   : > { %v1709_v52 = vadd.f32 1.0, %v2698_v19 }
 0x1bc   : > { %1849 = vst [vmem:[%s3352_s27 + $0x20] sm:$0xff] %v1809_v48 }
 0x1bd   : > { %v2700_v4 = vpop.eup %2699  ;;  %2711 = vrcp.f32 %v1709_v52 }
 0x1be   : > { %v2702_v50 = vpop.eup %2701  ;;  %v1814_v53 = vmul.f32 %v2700_v4, %v3459_v37 }
 0x1bf   : > { %v1714_v7 = vadd.f32 1.0, %v2702_v50 }
 0x1c0   : > { %1854 = vst [vmem:[%s3352_s27 + $0x48] sm:$0xff] %v1814_v53 }
 0x1c1   : > { %v2704_v0 = vpop.eup %2703  ;;  %2713 = vrcp.f32 %v1714_v7 }
 0x1c2   : > { %v2706_v2 = vpop.eup %2705  ;;  %v1819_v10 = vmul.f32 %v2704_v0, %v3470_v43 }
 0x1c3   : > { %v1719_v51 = vadd.f32 1.0, %v2706_v2 }
 0x1c4   : > { %1859 = vst [vmem:[%s3352_s27 + $0x70] sm:$0xff] %v1819_v10 }
 0x1c5   : > { %v2708_v15 = vpop.eup %2707  ;;  %2715 = vrcp.f32 %v1719_v51 }
 0x1c6   : > { %v2710_v8 = vpop.eup %2709  ;;  %v1824_v12 = vmul.f32 %v2708_v15, %v3479_v11 }
 0x1c7   : > { %v1724_v37 = vadd.f32 1.0, %v2710_v8 }
 0x1c8   : > { %1864 = vst [vmem:[%s3352_s27 + $0x98] sm:$0xff] %v1824_v12 }
 0x1c9   : > { %2717 = vrcp.f32 %v1724_v37 }
 0x1ca   : > { %v2712_v61 = vpop.eup %2711 }
 0x1cb   : > { %v1829_v17 = vmul.f32 %v2712_v61, %v3487_v22 }
 0x1cd   : > { %1869 = vst [vmem:[%s3352_s27 + $0xc0] sm:$0xff] %v1829_v17 }
 0x1ce   : > { %v2714_v43 = vpop.eup %2713 }
 0x1cf   : > { %v1834_v35 = vmul.f32 %v2714_v43, %v3495_v59 }
 0x1d1   : > { %1874 = vst [vmem:[%s3352_s27 + $0xe8] sm:$0xff] %v1834_v35 }
 0x1d2   : > { %v2716_v21 = vpop.eup %2715 }
 0x1d3   : > { %v1839_v6 = vmul.f32 %v2716_v21, %v1559_v47 }
 0x1d5   : > { %1879 = vst [vmem:[%s3352_s27 + $0x110] sm:$0xff] %v1839_v6 }
 0x1d6   : > { %v2718_v11 = vpop.eup %2717 }
 0x1d7   : > { %v1844_v13 = vmul.f32 %v2718_v11, %v1562_v39 }
 0x1d9   : > { %1884 = vst [vmem:[%s3352_s27 + $0x138] sm:$0xff] %v1844_v13 }
 0x1da   : > { %2814 = shalt.err (!%p2811_p6)
}
 0x1db   : > { %s2815_s29 = scalar_lea.hbm %s3530_s8, 5120  ;;  %s2819_s5 = scalar_lea.hbm %s3584_s3, 10240 }
 0x1dc   : > { %p2816_p8 = scmp.ne.s32.totalorder %s3530_s8, %s2815_s29  ;;  %p2820_p11 = scmp.lt.s32.totalorder %s3530_s8, %s3584_s3 }
 0x1dd   : > { %p2821_p12 = scmp.lt.s32.totalorder %s2819_s5, %s2815_s29 }
 0x1de   : > { %p2817_p5 = pnand %p2816_p8, %p3597_p10 }
 0x1df   : > { %p2822_p13 = por %p2821_p12, %p2820_p11 }
 0x1e0   : > { %p2818_p9 = pneg %p2817_p5 }
 0x1e2   : > { %p2823_p7 = pnand %p2822_p13, %p2818_p9 }
 0x1e4   : > { %2826 = shalt.err (!%p2823_p7)
}
 0x1e5   : > { %s2897_s27 = smov 640   ;;  %s2898_s10 = smov 1280  }
 0x1e6   : > { %s2899_s6 = smov 40  }
 0x1e7   : > { %2296 = dma.vmem_to_hbm [thread:$0]  (%p3597_p10), %s3532_s19, 5120, %s3530_s8, %s1886_s9, %s2897_s27, %s2898_s10, %s2899_s6  }
 0x1e8 PF: > { %s1917_s4 = sand.u32 1, %s2865_s12   ;;  %p3598_p2 = scmp.ne.s32.totalorder %s3591_s26, 0 }
 0x1e9   : > { %p3599_p1 = scmp.ge.s32.totalorder %s2885_s17, 2  ;;  %s1918_s11 = scalar_lea.sflag [#allocation4], %s1917_s4 }
 0x1eb   : > { %p2310_p0 = pnand %p3599_p1, %p3598_p2 }
 0x1ed   : > { %p2311_p3 = pneg %p2310_p0 }
 0x1ef   : > { %2860 = dma.done.wait (%p2311_p3), %s1918_s11, 5120  }
 0x1f0   : > { %2862 = vsyncadd (%p2311_p3), %s1918_s11, 4294962176  ;;  %s20_s17 = sadd.s32 1, %s2885_s17   ;;  %s3600_s12 = smov %s2869_s13 }
 0x1f1   : > { %p17_p4 = scmp.ge.s32.totalorder %s20_s17, 4   ;;  %s3601_s13 = smov %s2873_s14 }
 0x1f2   : > { %s3602_s14 = smov %s2968_s24  ;;  %s3603_s15 = smov %s2881_s16 }
 0x1f3   : > { %s3604_s16 = smov %s3606_s18  ;;  %19 = sbr.rel (!%p17_p4) target bundleno = 7 (0x7), region = 94 }
 0x1f8   :  { %1923 = vsyncpa [#allocation3], 1 }
 0x1f9   :  { %1925 = vsyncpa [#allocation3 + $0x1], 1 }
 0x1fa   :  { %1926 = vsyncpa [#allocation6], 1 }
 0x1fb   :  { %1928 = vsyncpa [#allocation6 + $0x1], 1 }
 0x1fc   :  { %1929 = vsyncpa [#allocation4], 1 }
 0x1fd   :  { %1931 = vsyncpa [#allocation4 + $0x1], 1 }

</bundles_post_ra>
